<compile_context>
chip_gen: v7x
topology: tpu7x:2x2x1
jax: 0.10.0
libtpu: 0.0.40
codegen_flags: <defaults>
</compile_context>

<pallas_src>
import jax
import jax.numpy as jnp
from jax.experimental import pallas as pl
from jax.experimental.pallas import tpu as pltpu

D_IN, H1, H2, H3, D_OUT = 768, 400, 200, 100, 1
# 128-aligned padded widths (layout plumbing done once in the wrapper).
H1P, H2P, H3P = 512, 256, 128


def _round_up(n, m):
    return ((n + m - 1) // m) * m


def _elu(x):
    # ELU with alpha=1.0 (PyTorch default): x if x > 0 else exp(x) - 1
    # (exp-1 instead of expm1 for maximal Mosaic lowering safety; the
    #  difference is far below the bf16 tolerance used here).
    return jnp.where(x > 0, x, jnp.exp(jnp.minimum(x, 0.0)) - 1.0)


def _mlp_kernel(x_ref,
                w1_ref, b1_ref,
                w2_ref, b2_ref,
                w3_ref, b3_ref,
                w4_ref, b4_ref,
                o_ref):
    # x streams in as f32; cast to bf16 for the MXU, accumulate in f32.
    x = x_ref[...].astype(jnp.bfloat16)

    h = jnp.dot(x, w1_ref[...], preferred_element_type=jnp.float32) + b1_ref[...]
    h = _elu(h)                                                     # f32 VPU/EUP
    h = jnp.dot(h.astype(jnp.bfloat16), w2_ref[...],
                preferred_element_type=jnp.float32) + b2_ref[...]
    h = _elu(h)
    h = jnp.dot(h.astype(jnp.bfloat16), w3_ref[...],
                preferred_element_type=jnp.float32) + b3_ref[...]
    h = _elu(h)

    # Layer 4 (H3P -> 1): only one useful output column, so skip the MXU.
    # VPU broadcast-multiply by the w4 row + XLU lane reduction -> (bb, 1).
    logits = jnp.sum(h * w4_ref[...], axis=-1, keepdims=True) + b4_ref[...]

    # Compact (bb, 1) store: 4 B/row of HBM writeback, sigmoid only on the
    # useful values.
    o_ref[...] = jax.nn.sigmoid(logits)


def _prepare_params(params):
    """Pad weights/biases to 128-aligned shapes; matmul weights in bf16."""
    (w1, b1), (w2, b2), (w3, b3), (w4, b4) = params

    def pad_w(w, in_p, out_p):
        fi, fo = w.shape
        wp = jnp.zeros((in_p, out_p), jnp.float32)
        wp = wp.at[:fi, :fo].set(w)
        return wp.astype(jnp.bfloat16)

    def pad_b(b, out_p):
        bp = jnp.zeros((1, out_p), jnp.float32)
        return bp.at[:, :b.shape[-1]].set(b.reshape(1, -1))

    # w4 is used as a broadcast row on the VPU -> keep it in f32, shape (1, H3P).
    w4_row = jnp.zeros((1, H3P), jnp.float32).at[:, :H3].set(w4.reshape(1, -1)[:, :H3].T.reshape(1, -1)
                                                             if w4.shape == (1, H3) else w4[:, 0][None, :])
    b4_s = jnp.asarray(b4, jnp.float32).reshape(1, 1)

    return (pad_w(w1, D_IN, H1P), pad_b(b1, H1P),
            pad_w(w2, H1P, H2P),  pad_b(b2, H2P),
            pad_w(w3, H2P, H3P),  pad_b(b3, H3P),
            w4_row, b4_s)


def f_model_toxic_forward(x, params, *, block_b=1024):
    """x: (B, 768) float32  ->  (B,) float32 (sigmoid probabilities)."""
    B = x.shape[0]

    # Batch tile: sublane-aligned, capped at ~B/2 so the parallel grid has at
    # least 2 steps (both v7x TensorCores stay busy) whenever B > 8.
    if B <= 8:
        bb = B                       # block dim == full array dim: always legal
    else:
        bb = min(block_b, max(8, _round_up(pl.cdiv(B, 2), 8)))
    grid = pl.cdiv(B, bb)            # ragged last block allowed; OOB rows dropped

    (w1, b1, w2, b2, w3, b3, w4, b4) = _prepare_params(params)

    # Weights/biases (~1.1 MB bf16 total) use constant block indices, so they
    # stay resident in VMEM across the grid; only the x tile streams.
    def full_spec(shape):
        return pl.BlockSpec(shape, lambda i: (0,) * len(shape))

    matmul_flops = 2 * B * (D_IN * H1P + H1P * H2P + H2P * H3P) + 2 * B * H3P
    weight_bytes = 2 * (D_IN * H1P + H1P * H2P + H2P * H3P) \
        + 4 * (H1P + H2P + H3P + H3P + 1)
    cost = pl.CostEstimate(
        flops=matmul_flops,
        transcendentals=B * (H1P + H2P + H3P + 1),
        bytes_accessed=B * D_IN * 4 + B * 4 + weight_bytes,
    )

    out = pl.pallas_call(
        _mlp_kernel,
        out_shape=jax.ShapeDtypeStruct((B, 1), jnp.float32),
        grid_spec=pltpu.PrefetchScalarGridSpec(
            num_scalar_prefetch=0,
            grid=(grid,),
            in_specs=[
                pl.BlockSpec((bb, D_IN), lambda i: (i, 0)),   # streamed x tile (f32)
                full_spec((D_IN, H1P)), full_spec((1, H1P)),
                full_spec((H1P, H2P)),  full_spec((1, H2P)),
                full_spec((H2P, H3P)),  full_spec((1, H3P)),
                full_spec((1, H3P)),    full_spec((1, 1)),
            ],
            out_specs=pl.BlockSpec((bb, 1), lambda i: (i, 0)),
        ),
        compiler_params=pltpu.CompilerParams(
            dimension_semantics=("parallel",),
            vmem_limit_bytes=32 * 1024 * 1024,
        ),
        cost_estimate=cost,
    )(x, w1, b1, w2, b2, w3, b3, w4, b4)

    return out[:, 0]  # squeeze(dim=-1)


def init_params(key):
    """Deterministic synthetic parameters (PyTorch-Linear-style uniform init)."""
    def linear(key, fan_in, fan_out):
        kw, kb = jax.random.split(key)
        bound = 1.0 / jnp.sqrt(fan_in)
        w = jax.random.uniform(kw, (fan_in, fan_out), jnp.float32, -bound, bound)
        b = jax.random.uniform(kb, (1, fan_out), jnp.float32, -bound, bound)
        return w, b

    k1, k2, k3, k4 = jax.random.split(key, 4)
    return (linear(k1, D_IN, H1),
            linear(k2, H1, H2),
            linear(k3, H2, H3),
            linear(k4, H3, D_OUT))


def _reference_forward(x, params):
    """Pure-JAX f32 reference for a sanity check."""
    (w1, b1), (w2, b2), (w3, b3), (w4, b4) = params
    h = _elu(x @ w1 + b1)
    h = _elu(h @ w2 + b2)
    h = _elu(h @ w3 + b3)
    logits = h @ w4 + b4
    return jax.nn.sigmoid(logits)[:, 0]


if __name__ == "__main__":
    key = jax.random.PRNGKey(0)
    kx, kp = jax.random.split(key)

    B = 16  # small demo batch (wrapper tiles / splits across cores as needed)
    x = jax.random.normal(kx, (B, D_IN), dtype=jnp.float32)
    params = init_params(kp)

    out = f_model_toxic_forward(x, params)
    out = jax.block_until_ready(out)

    ref = _reference_forward(x, params)
    assert out.shape == (B,), out.shape
    # bf16 MXU operands vs f32 reference -> loosened tolerance.
    assert jnp.allclose(out, ref, atol=2e-2, rtol=0.0), (out, ref)

    print("KERNEL_OK")
</pallas_src>

<mosaic_0001>
module attributes {stable_mosaic.version = 11 : i64} {
  func.func @_mlp_kernel(%arg0: i32, %arg1: memref<8x768xf32, #tpu.memory_space<vmem>>, %arg2: memref<768x512xbf16, #tpu.memory_space<vmem>>, %arg3: memref<1x512xf32, #tpu.memory_space<vmem>>, %arg4: memref<512x256xbf16, #tpu.memory_space<vmem>>, %arg5: memref<1x256xf32, #tpu.memory_space<vmem>>, %arg6: memref<256x128xbf16, #tpu.memory_space<vmem>>, %arg7: memref<1x128xf32, #tpu.memory_space<vmem>>, %arg8: memref<1x128xf32, #tpu.memory_space<vmem>>, %arg9: memref<1x1xf32, #tpu.memory_space<vmem>>, %arg10: memref<8x1xf32, #tpu.memory_space<vmem>>) attributes {dimension_semantics = [#tpu.dimension_semantics<parallel>], iteration_bounds = array<i64: 2>, scalar_prefetch = 0 : i64, scratch_operands = 0 : i64, tpu.core_type = #tpu.core_type<tc>, window_params = [{transform_indices = @transform_0, window_bounds = array<i64: 8, 768>}, {pipeline_mode = #tpu.pipeline_mode<synchronous>, transform_indices = @transform_1, window_bounds = array<i64: 768, 512>}, {pipeline_mode = #tpu.pipeline_mode<synchronous>, transform_indices = @transform_2, window_bounds = array<i64: 1, 512>}, {pipeline_mode = #tpu.pipeline_mode<synchronous>, transform_indices = @transform_3, window_bounds = array<i64: 512, 256>}, {pipeline_mode = #tpu.pipeline_mode<synchronous>, transform_indices = @transform_4, window_bounds = array<i64: 1, 256>}, {pipeline_mode = #tpu.pipeline_mode<synchronous>, transform_indices = @transform_5, window_bounds = array<i64: 256, 128>}, {pipeline_mode = #tpu.pipeline_mode<synchronous>, transform_indices = @transform_6, window_bounds = array<i64: 1, 128>}, {pipeline_mode = #tpu.pipeline_mode<synchronous>, transform_indices = @transform_7, window_bounds = array<i64: 1, 128>}, {pipeline_mode = #tpu.pipeline_mode<synchronous>, transform_indices = @transform_8, window_bounds = array<i64: 1, 1>}, {transform_indices = @transform_9, window_bounds = array<i64: 8, 1>}]} {
    %c0 = arith.constant 0 : index
    %c0_0 = arith.constant 0 : index
    %0 = vector.load %arg1[%c0, %c0_0] : memref<8x768xf32, #tpu.memory_space<vmem>>, vector<8x768xf32>
    %1 = arith.truncf %0 : vector<8x768xf32> to vector<8x768xbf16>
    %c0_1 = arith.constant 0 : index
    %c0_2 = arith.constant 0 : index
    %2 = vector.load %arg2[%c0_1, %c0_2] : memref<768x512xbf16, #tpu.memory_space<vmem>>, vector<768x512xbf16>
    %cst = arith.constant dense<0.000000e+00> : vector<8x512xf32>
    %3 = tpu.matmul %1, %2, %cst {dimension_numbers = #tpu.dot_dimension_numbers<[1], [0], [0], [1], [0, 0, 1, 1], [], []>} : vector<8x768xbf16>, vector<768x512xbf16>, vector<8x512xf32> -> vector<8x512xf32>
    %c0_3 = arith.constant 0 : index
    %c0_4 = arith.constant 0 : index
    %4 = vector.load %arg3[%c0_3, %c0_4] : memref<1x512xf32, #tpu.memory_space<vmem>>, vector<1x512xf32>
    %5 = vector.broadcast %4 : vector<1x512xf32> to vector<8x512xf32>
    %6 = arith.addf %3, %5 : vector<8x512xf32>
    %cst_5 = arith.constant 0.000000e+00 : f32
    %7 = vector.broadcast %cst_5 : f32 to vector<8x512xf32>
    %8 = arith.cmpf ogt, %6, %7 : vector<8x512xf32>
    %cst_6 = arith.constant 0.000000e+00 : f32
    %9 = vector.broadcast %cst_6 : f32 to vector<8x512xf32>
    %10 = arith.minimumf %6, %9 : vector<8x512xf32>
    %11 = math.exp %10 : vector<8x512xf32>
    %cst_7 = arith.constant 1.000000e+00 : f32
    %12 = vector.broadcast %cst_7 : f32 to vector<8x512xf32>
    %13 = arith.subf %11, %12 : vector<8x512xf32>
    %14 = arith.select %8, %6, %13 : vector<8x512xi1>, vector<8x512xf32>
    %15 = arith.truncf %14 : vector<8x512xf32> to vector<8x512xbf16>
    %c0_8 = arith.constant 0 : index
    %c0_9 = arith.constant 0 : index
    %16 = vector.load %arg4[%c0_8, %c0_9] : memref<512x256xbf16, #tpu.memory_space<vmem>>, vector<512x256xbf16>
    %cst_10 = arith.constant dense<0.000000e+00> : vector<8x256xf32>
    %17 = tpu.matmul %15, %16, %cst_10 {dimension_numbers = #tpu.dot_dimension_numbers<[1], [0], [0], [1], [0, 0, 1, 1], [], []>} : vector<8x512xbf16>, vector<512x256xbf16>, vector<8x256xf32> -> vector<8x256xf32>
    %c0_11 = arith.constant 0 : index
    %c0_12 = arith.constant 0 : index
    %18 = vector.load %arg5[%c0_11, %c0_12] : memref<1x256xf32, #tpu.memory_space<vmem>>, vector<1x256xf32>
    %19 = vector.broadcast %18 : vector<1x256xf32> to vector<8x256xf32>
    %20 = arith.addf %17, %19 : vector<8x256xf32>
    %cst_13 = arith.constant 0.000000e+00 : f32
    %21 = vector.broadcast %cst_13 : f32 to vector<8x256xf32>
    %22 = arith.cmpf ogt, %20, %21 : vector<8x256xf32>
    %cst_14 = arith.constant 0.000000e+00 : f32
    %23 = vector.broadcast %cst_14 : f32 to vector<8x256xf32>
    %24 = arith.minimumf %20, %23 : vector<8x256xf32>
    %25 = math.exp %24 : vector<8x256xf32>
    %cst_15 = arith.constant 1.000000e+00 : f32
    %26 = vector.broadcast %cst_15 : f32 to vector<8x256xf32>
    %27 = arith.subf %25, %26 : vector<8x256xf32>
    %28 = arith.select %22, %20, %27 : vector<8x256xi1>, vector<8x256xf32>
    %29 = arith.truncf %28 : vector<8x256xf32> to vector<8x256xbf16>
    %c0_16 = arith.constant 0 : index
    %c0_17 = arith.constant 0 : index
    %30 = vector.load %arg6[%c0_16, %c0_17] : memref<256x128xbf16, #tpu.memory_space<vmem>>, vector<256x128xbf16>
    %cst_18 = arith.constant dense<0.000000e+00> : vector<8x128xf32>
    %31 = tpu.matmul %29, %30, %cst_18 {dimension_numbers = #tpu.dot_dimension_numbers<[1], [0], [0], [1], [0, 0, 1, 1], [], []>} : vector<8x256xbf16>, vector<256x128xbf16>, vector<8x128xf32> -> vector<8x128xf32>
    %c0_19 = arith.constant 0 : index
    %c0_20 = arith.constant 0 : index
    %32 = vector.load %arg7[%c0_19, %c0_20] : memref<1x128xf32, #tpu.memory_space<vmem>>, vector<1x128xf32>
    %33 = vector.broadcast %32 : vector<1x128xf32> to vector<8x128xf32>
    %34 = arith.addf %31, %33 : vector<8x128xf32>
    %cst_21 = arith.constant 0.000000e+00 : f32
    %35 = vector.broadcast %cst_21 : f32 to vector<8x128xf32>
    %36 = arith.cmpf ogt, %34, %35 : vector<8x128xf32>
    %cst_22 = arith.constant 0.000000e+00 : f32
    %37 = vector.broadcast %cst_22 : f32 to vector<8x128xf32>
    %38 = arith.minimumf %34, %37 : vector<8x128xf32>
    %39 = math.exp %38 : vector<8x128xf32>
    %cst_23 = arith.constant 1.000000e+00 : f32
    %40 = vector.broadcast %cst_23 : f32 to vector<8x128xf32>
    %41 = arith.subf %39, %40 : vector<8x128xf32>
    %42 = arith.select %36, %34, %41 : vector<8x128xi1>, vector<8x128xf32>
    %c0_24 = arith.constant 0 : index
    %c0_25 = arith.constant 0 : index
    %43 = vector.load %arg8[%c0_24, %c0_25] : memref<1x128xf32, #tpu.memory_space<vmem>>, vector<1x128xf32>
    %44 = vector.broadcast %43 : vector<1x128xf32> to vector<8x128xf32>
    %45 = arith.mulf %42, %44 : vector<8x128xf32>
    %cst_26 = arith.constant dense<0.000000e+00> : vector<8xf32>
    %46 = vector.multi_reduction <add>, %45, %cst_26 [1] : vector<8x128xf32> to vector<8xf32>
    %47 = vector.shape_cast %46 : vector<8xf32> to vector<8x1xf32>
    %c0_27 = arith.constant 0 : index
    %c0_28 = arith.constant 0 : index
    %48 = vector.load %arg9[%c0_27, %c0_28] : memref<1x1xf32, #tpu.memory_space<vmem>>, vector<1x1xf32>
    %49 = vector.broadcast %48 : vector<1x1xf32> to vector<8x1xf32>
    %50 = arith.addf %47, %49 : vector<8x1xf32>
    %51 = arith.negf %50 : vector<8x1xf32>
    %52 = math.exp %51 : vector<8x1xf32>
    %cst_29 = arith.constant 1.000000e+00 : f32
    %53 = vector.broadcast %cst_29 : f32 to vector<8x1xf32>
    %54 = arith.addf %53, %52 : vector<8x1xf32>
    %55 = arith.divf %53, %54 : vector<8x1xf32>
    %c0_30 = arith.constant 0 : index
    %c0_31 = arith.constant 0 : index
    %56 = vector.load %arg10[%c0_30, %c0_31] : memref<8x1xf32, #tpu.memory_space<vmem>>, vector<8x1xf32>
    tpu.vector_store %arg10[%c0_30, %c0_31], %55 {strides = array<i32>} : memref<8x1xf32, #tpu.memory_space<vmem>>, vector<8x1xf32>,
    return
  }
  func.func @transform_0(%arg0: i32) -> (i32, i32) {
    %c0_i32 = arith.constant 0 : i32
    %c0_i32_0 = arith.constant 0 : i32
    return %arg0, %c0_i32 : i32, i32
  }
  func.func @transform_1(%arg0: i32) -> (i32, i32) {
    %c0_i32 = arith.constant 0 : i32
    %c0_i32_0 = arith.constant 0 : i32
    %c0_i32_1 = arith.constant 0 : i32
    return %c0_i32, %c0_i32_0 : i32, i32
  }
  func.func @transform_2(%arg0: i32) -> (i32, i32) {
    %c0_i32 = arith.constant 0 : i32
    %c0_i32_0 = arith.constant 0 : i32
    %c0_i32_1 = arith.constant 0 : i32
    return %c0_i32, %c0_i32_0 : i32, i32
  }
  func.func @transform_3(%arg0: i32) -> (i32, i32) {
    %c0_i32 = arith.constant 0 : i32
    %c0_i32_0 = arith.constant 0 : i32
    %c0_i32_1 = arith.constant 0 : i32
    return %c0_i32, %c0_i32_0 : i32, i32
  }
  func.func @transform_4(%arg0: i32) -> (i32, i32) {
    %c0_i32 = arith.constant 0 : i32
    %c0_i32_0 = arith.constant 0 : i32
    %c0_i32_1 = arith.constant 0 : i32
    return %c0_i32, %c0_i32_0 : i32, i32
  }
  func.func @transform_5(%arg0: i32) -> (i32, i32) {
    %c0_i32 = arith.constant 0 : i32
    %c0_i32_0 = arith.constant 0 : i32
    %c0_i32_1 = arith.constant 0 : i32
    return %c0_i32, %c0_i32_0 : i32, i32
  }
  func.func @transform_6(%arg0: i32) -> (i32, i32) {
    %c0_i32 = arith.constant 0 : i32
    %c0_i32_0 = arith.constant 0 : i32
    %c0_i32_1 = arith.constant 0 : i32
    return %c0_i32, %c0_i32_0 : i32, i32
  }
  func.func @transform_7(%arg0: i32) -> (i32, i32) {
    %c0_i32 = arith.constant 0 : i32
    %c0_i32_0 = arith.constant 0 : i32
    %c0_i32_1 = arith.constant 0 : i32
    return %c0_i32, %c0_i32_0 : i32, i32
  }
  func.func @transform_8(%arg0: i32) -> (i32, i32) {
    %c0_i32 = arith.constant 0 : i32
    %c0_i32_0 = arith.constant 0 : i32
    %c0_i32_1 = arith.constant 0 : i32
    return %c0_i32, %c0_i32_0 : i32, i32
  }
  func.func @transform_9(%arg0: i32) -> (i32, i32) {
    %c0_i32 = arith.constant 0 : i32
    %c0_i32_0 = arith.constant 0 : i32
    return %arg0, %c0_i32 : i32, i32
  }
}

</mosaic_0001>

<bundles_post_ra>
// kernel: tpu_custom_call.1
= control target key start
LH: loop header
LB: loop body
LE: loop exit
PB: predicated region body
PF: predicated region fallthrough
CT: control target
= control target key end

     0   :  { %s3968_s0 = inlined_call_operand.hbm [shape: f32[16,768], index: 0, kind: input, shape index: {}]   ;;  %s3969_s1 = inlined_call_operand.hbm [shape: bf16[768,512], index: 1, kind: input, shape index: {}]   ;;  %s3970_s2 = inlined_call_operand.vmem [shape: f32[1,512], index: 2, kind: input, shape index: {}]   ;;  %s3971_s3 = inlined_call_operand.hbm [shape: bf16[512,256], index: 3, kind: input, shape index: {}]   ;;  %s3972_s4 = inlined_call_operand.vmem [shape: f32[1,256], index: 4, kind: input, shape index: {}]   ;;  %s3973_s5 = inlined_call_operand.hbm [shape: bf16[256,128], index: 5, kind: input, shape index: {}]   ;;  %s3974_s6 = inlined_call_operand.vmem [shape: f32[1,128], index: 6, kind: input, shape index: {}]   ;;  %s3975_s7 = inlined_call_operand.vmem [shape: f32[1,128], index: 7, kind: input, shape index: {}]   ;;  %s3976_s8 = inlined_call_operand.<no memory space> [shape: f32[1,1], index: 8, kind: input, shape index: {}]   ;;  %s3977_s9 = inlined_call_operand.vmem [shape: f32[16,1], index: 9, kind: output, shape index: {}]  }
   0x1   :  { %v14_v0 = vstv %s3976_s8 }
   0x2   :  { %15 = vst [vmem:[#allocation2] sm:$0x1] %v14_v0 }
   0x3   :  { %16 = vsyncpa [#allocation4], 0 }
   0x4   :  { %18 = vsyncpa [#allocation4 + $0x1], 0 }
   0x5   :  { %19 = vsyncpa [#allocation6], 0 }
   0x6   :  { %20 = vsyncpa [#allocation9], 0  ;;  %s3710_s11 = smov 0   ;;  %s3712_s12 = smov 0  }
   0x7   :  { %s3714_s13 = smov 0   ;;  %s3716_s14 = smov 0  }
   0x8 LB: > { %s3729_s8 = sadd.s32 4294967295, %s3645_s14   ;;  %p46_p0 = scmp.ne.s32.totalorder %s3637_s12, %s3633_s11  ;;  %s3645_s14 = sphi %s3716_s14, %s3995_s14   ;;  %s3641_s13 = sphi %s3714_s13, %s3994_s13   ;;  %s3637_s12 = sphi %s3712_s12, %s3993_s12   ;;  %s3633_s11 = sphi %s3710_s11, %s3992_s11  }
   0x9   : > { %p3978_p1 = scmp.eq.s32.totalorder %s3729_s8, 0  ;;  %p2650_p2 = scmp.ge.s32.totalorder %s3645_s14, 1 }
   0xa   : > { %p251_p3 = scmp.lt.s32.totalorder %s3645_s14, 3  ;;  %s3647_s17 = smov [#allocation5]  }
   0xb   : > { %p3737_p4 = por %p3978_p1, %p46_p0  ;;  %s263_s18 = sshll.u32 %s3647_s17, 4  ;;  %s264_s18 = int_to_ptr.vmem [resolvable:$true] %s263_s18 }
   0xc   : > { %p3741_p5 = pnand %p2650_p2, %p251_p3  ;;  %s3648_s20 = smov [#allocation7]  }
   0xd   : > { %s3981_s15 = scalar_select %p3737_p4, 1, 0 }
   0xe   : > { %s3982_s16 = scalar_select %p3741_p5, 1, 0 }
   0xf   : > { %p3009_p6 = pneg %p3741_p5  ;;  %s279_s21 = sshll.u32 %s3648_s20, 4  ;;  %s3753_s21 = int_to_ptr.vmem [resolvable:$true] %s279_s21 }
  0x10   : > { %s3489_s24 = scalar_lea.hbm %s3969_s1, 24576 }
  0x11   : > { %p3749_p7 = pnand %p3009_p6, %p3978_p1  ;;  %p3490_p8 = scmp.ne.s32.totalorder %s3969_s1, %s3489_s24 }
  0x12   : > { %p3496_p12 = scmp.lt.u32.totalorder %s3489_s24, %s3969_s1 }
  0x13   : > { %p3763_p9 = pneg %p3749_p7 }
  0x15   : > { %p3492_p10 = pnand %p3763_p9, %p3490_p8 }
  0x17   : > { %p3493_p11 = pneg %p3492_p10 }
  0x19   : > { %p3498_p13 = pnand %p3496_p12, %p3493_p11 }
  0x1b   : > { %3501 = shalt.err (!%p3498_p13)
}
  0x1c   : > { %s3502_s30 = scalar_lea.vmem %s264_s18, 24576  ;;  %p3510_p6 = scmp.lt.s32.totalorder %s264_s18, %s264_s18 }
  0x1d   : > { %p3503_p0 = scmp.ne.s32.totalorder %s264_s18, %s3502_s30  ;;  %p3511_p1 = scmp.lt.s32.totalorder %s3502_s30, %s3502_s30 }
  0x1f   : > { %p3505_p2 = pnand %p3503_p0, %p3763_p9  ;;  %p3512_p4 = por %p3511_p1, %p3510_p6 }
  0x21   : > { %p3506_p3 = pneg %p3505_p2 }
  0x23   : > { %p3513_p5 = pnand %p3512_p4, %p3506_p3 }
  0x25   : > { %3516 = shalt.err (!%p3513_p5)
}
  0x26   : > { %s3649_s10 = smov 256   ;;  %s3650_s11 = smov 16  }
  0x27   : > { %3012 = dma.hbm_to_vmem [thread:$0]  (!%p3749_p7), %s3969_s1, 24576, %s264_s18, [#allocation6], %s3649_s10, %s3649_s10, %s3650_s11  }
  0x28   : > { %s3517_s24 = scalar_lea.hbm %s3971_s3, 8192 }
  0x29   : > { %p3518_p8 = scmp.ne.s32.totalorder %s3971_s3, %s3517_s24  ;;  %p3524_p5 = scmp.lt.u32.totalorder %s3517_s24, %s3971_s3 }
  0x2b   : > { %p3520_p1 = pnand %p3518_p8, %p3763_p9 }
  0x2d   : > { %p3521_p4 = pneg %p3520_p1 }
  0x2f   : > { %p3526_p10 = pnand %p3524_p5, %p3521_p4 }
  0x31   : > { %3529 = shalt.err (!%p3526_p10)
}
  0x32   : > { %s3530_s18 = scalar_lea.vmem %s3753_s21, 8192  ;;  %p3538_p0 = scmp.lt.s32.totalorder %s3753_s21, %s3753_s21 }
  0x33   : > { %p3531_p11 = scmp.ne.s32.totalorder %s3753_s21, %s3530_s18  ;;  %p3539_p2 = scmp.lt.s32.totalorder %s3530_s18, %s3530_s18 }
  0x35   : > { %p3533_p12 = pnand %p3531_p11, %p3763_p9  ;;  %p3540_p3 = por %p3539_p2, %p3538_p0 }
  0x37   : > { %p3534_p13 = pneg %p3533_p12 }
  0x39   : > { %p3541_p6 = pnand %p3540_p3, %p3534_p13 }
  0x3b   : > { %3544 = shalt.err (!%p3541_p6)
}
  0x3c   : > { %s3651_s30 = smov 128   ;;  %s3652_s10 = smov 8  }
  0x3d   : > { %3015 = dma.hbm_to_vmem [thread:$0]  (!%p3749_p7), %s3971_s3, 8192, %s3753_s21, [#allocation6], %s3651_s30, %s3651_s30, %s3652_s10  }
  0x3e   : > { %s3653_s20 = smov [#allocation8]   ;;  %s3545_s25 = scalar_lea.hbm %s3973_s5, 2048 }
  0x3f   : > { %s295_s22 = sshll.u32 %s3653_s20, 4  ;;  %p3546_p8 = scmp.ne.s32.totalorder %s3973_s5, %s3545_s25  ;;  %s296_s22 = int_to_ptr.vmem [resolvable:$true] %s295_s22 }
  0x40   : > { %p3552_p5 = scmp.lt.u32.totalorder %s3545_s25, %s3973_s5 }
  0x41   : > { %p3548_p1 = pnand %p3546_p8, %p3763_p9 }
  0x43   : > { %p3549_p4 = pneg %p3548_p1 }
  0x45   : > { %p3554_p10 = pnand %p3552_p5, %p3549_p4 }
  0x47   : > { %3557 = shalt.err (!%p3554_p10)
}
  0x48   : > { %s3558_s21 = scalar_lea.vmem %s296_s22, 2048  ;;  %p3566_p0 = scmp.lt.s32.totalorder %s296_s22, %s296_s22 }
  0x49   : > { %p3559_p11 = scmp.ne.s32.totalorder %s296_s22, %s3558_s21  ;;  %p3567_p2 = scmp.lt.s32.totalorder %s3558_s21, %s3558_s21 }
  0x4b   : > { %p3561_p12 = pnand %p3559_p11, %p3763_p9  ;;  %p3568_p3 = por %p3567_p2, %p3566_p0 }
  0x4d   : > { %p3562_p13 = pneg %p3561_p12 }
  0x4f   : > { %p3569_p6 = pnand %p3568_p3, %p3562_p13 }
  0x51   : > { %3572 = shalt.err (!%p3569_p6)
}
  0x52   : > { %s3654_s30 = smov 64   ;;  %s3655_s27 = smov 4  }
  0x53   : > { %3018 = dma.hbm_to_vmem [thread:$0]  (!%p3749_p7), %s3973_s5, 2048, %s296_s22, [#allocation9], %s3654_s30, %s3654_s30, %s3655_s27  }
  0x54   : > { %s3821_s17 = sadd.s32 1, %s3645_s14   ;;  %s33_s23 = sadd.s32 1, %s3641_s13 }
  0x55   : > { %s30_s20 = ssub.s32 %s3645_s14, %s3821_s17  ;;  %p40_p8 = scmp.ne.s32.totalorder %s3641_s13, %s3637_s12 }
  0x56   : > { %p31_p9 = scmp.eq.s32.totalorder %s30_s20, 0  ;;  %p41_p1 = scmp.eq.s32.totalorder %s3645_s14, 0 }
  0x57   : > { %p3026_p4 = scmp.lt.s32.totalorder %s3645_s14, 2  ;;  %s318_s25 = sand.u32 1, %s3641_s13  }
  0x58   : > { %s3831_s24 = scalar_select %p31_p9, %s3641_s13, %s33_s23  }
  0x59   : > { %p42_p5 = por %p41_p1, %p40_p8  ;;  %s2992_s26 = smul.u32 48, %s318_s25 }
  0x5a   : > { %s2993_s28 = smul.u32 768, %s3645_s14  ;;  %s319_s14 = scalar_lea.sflag [#allocation4], %s318_s25 }
  0x5b   : > { %p3835_p10 = pnand %p3026_p4, %p42_p5  ;;  %s322_s21 = scalar_lea.vmem [#allocation3], %s2992_s26 }
  0x5c   : > { %s3842_s18 = scalar_lea.hbm %s3968_s0, %s2993_s28  ;;  %s330_s30 = sshll.u32 %s322_s21, 4  ;;  %s3844_s30 = int_to_ptr.vmem [resolvable:$true] %s330_s30 }
  0x5d   : > { %s3573_s27 = scalar_lea.hbm %s3842_s18, 768  ;;  %p3575_p11 = pneg %p3835_p10 }
  0x5e   : > { %p3574_p7 = scmp.ne.s32.totalorder %s3842_s18, %s3573_s27  ;;  %s3578_s20 = scalar_lea.hbm %s3968_s0, 1536 }
  0x5f   : > { %p3579_p0 = scmp.lt.u32.totalorder %s3842_s18, %s3968_s0  ;;  %p3580_p2 = scmp.lt.u32.totalorder %s3578_s20, %s3573_s27 }
  0x60   : > { %p3576_p12 = pnand %p3575_p11, %p3574_p7  ;;  %p3582_p6 = scmp.lt.u32.totalorder %s3573_s27, %s3842_s18 }
  0x61   : > { %p3581_p3 = por %p3580_p2, %p3579_p0 }
  0x62   : > { %p3577_p13 = pneg %p3576_p12 }
  0x63   : > { %p3583_p9 = por %p3582_p6, %p3581_p3 }
  0x65   : > { %p3584_p8 = pnand %p3583_p9, %p3577_p13 }
  0x67   : > { %3587 = shalt.err (!%p3584_p8)
}
  0x68   : > { %s3588_s25 = scalar_lea.vmem %s3844_s30, 768  ;;  %s3656_s26 = smov [#allocation3]  }
  0x69   : > { %p3589_p1 = scmp.ne.s32.totalorder %s3844_s30, %s3588_s25  ;;  %s3593_s22 = sshll.u32 %s3656_s26, 4  ;;  %s3594_s22 = int_to_ptr.vmem [resolvable:$false] %s3593_s22 }
  0x6a   : > { %s3595_s29 = scalar_lea.vmem %s3594_s22, 1536  ;;  %p3596_p7 = scmp.lt.s32.totalorder %s3844_s30, %s3594_s22 }
  0x6b   : > { %p3591_p4 = pnand %p3589_p1, %p3575_p11  ;;  %p3597_p12 = scmp.lt.s32.totalorder %s3595_s29, %s3588_s25 }
  0x6d   : > { %p3592_p5 = pneg %p3591_p4  ;;  %p3598_p0 = por %p3597_p12, %p3596_p7 }
  0x6f   : > { %p3599_p2 = pnand %p3598_p0, %p3592_p5 }
  0x71   : > { %3602 = shalt.err (!%p3599_p2)
}
  0x72   : > { %3022 = dma.hbm_to_vmem [thread:$0]  (!%p3835_p10), %s3842_s18, 768, %s3844_s30, %s319_s14  }
  0x73   : > { %p3986_p13 = scmp.ne.s32.totalorder %s3982_s16, 0 }
  0x74   : > { %s341_s21 = sand.u32 (!%p3986_p13), 1, %s3637_s12   ;;  %p3987_p11 = scmp.ne.s32.totalorder (!%p3986_p13), %s3981_s15, 0 }
  0x75   : > { %339 = sbr.rel (%p3986_p13) target bundleno = 1268 (0x4f4), region = 56  ;;  %s342_s10 = scalar_lea.sflag (!%p3986_p13), [#allocation4], %s341_s21 }
  0x76   : > { %s2994_s27 = smul.u32 (!%p3986_p13), 48, %s341_s21 }
  0x78   : > { %s3874_s11 = scalar_lea.vmem (!%p3986_p13), [#allocation3], %s2994_s27 }
  0x7c   : > { %3620 = dma.done.wait (%p3987_p11), %s342_s10, 768  }
  0x7d   : > { %3622 = vsyncadd (%p3987_p11), %s342_s10, 4294966528  ;;  %p3988_p3 = scmp.eq.s32.totalorder %s3729_s8, 0 }
  0x7f   : > { %3624 = dma.done.wait (%p3988_p3), [#allocation6], 32768   ;;  %p3989_p10 = pmov %p3988_p3 }
  0x80   : > { %p3990_p6 = pmov %p3988_p3 }
  0x81   : > { %3626 = vsyncadd (%p3989_p10), [#allocation6], 4294934528 }
  0x82   : > { %3628 = dma.done.wait (%p3990_p6), [#allocation9], 2048   ;;  %p3991_p9 = pmov %p3988_p3 }
  0x83   : > { %v3071_v1 = vld [vmem:[#allocation5 + $0x4] ss:$16 sps:$4 sm:$0xff]   ;;  %v3075_v3 = vld [vmem:[#allocation5] ss:$16 sps:$4 sm:$0xff]   ;;  %v397_v47 = vld [vmem:[%s3874_s11 + $0x8] sm:$0xff]  ;;  %p391_p8 = scmp.lt.s32.totalorder %s3729_s8, 1 }
  0x84   : > { %3630 = vsyncadd (%p3991_p9), [#allocation9], 4294965248  ;;  %v3073_v2 = vld [vmem:[#allocation5 + $0x204] ss:$16 sps:$4 sm:$0xff]   ;;  %1582 = vmatprep.subr.bf16.mxu1 %v3071_v1  ;;  %v3076_v4 = vld [vmem:[#allocation5 + $0x200] ss:$16 sps:$4 sm:$0xff]   ;;  %v3889_v49 = vpack.c.bf16 %v397_v47, %v397_v47 }
  0x85   : > { %1623 = vmatprep.subr.bf16.mxu0 %v3073_v2  ;;  %v3077_v5 = vld [vmem:[#allocation5 + $0x24] ss:$16 sps:$4 sm:$0xff]   ;;  %1583 = vmatpush1.bf16.msra.mxu1 %v3075_v3  ;;  %v3081_v7 = vld [vmem:[#allocation5 + $0x20] ss:$16 sps:$4 sm:$0xff]   ;;  %v399_v50 = vld [vmem:[%s3874_s11 + $0x18] sm:$0xff]  ;;  %s3997_s8 = smov (!%p391_p8, %s3729_s8), 1 }
  0x86   : > { %1624 = vmatpush1.bf16.msra.mxu0 %v3076_v4  ;;  %v3079_v6 = vld [vmem:[#allocation5 + $0x224] ss:$16 sps:$4 sm:$0xff]   ;;  %1584 = vmatprep.subr.bf16.mxu1 %v3077_v5  ;;  %v3082_v8 = vld [vmem:[#allocation5 + $0x220] ss:$16 sps:$4 sm:$0xff]   ;;  %v3892_v53 = vpack.c.bf16 %v399_v50, %v399_v50  ;;  %v3224_v50 = vld [vmem:[#allocation5 + $0x128] ss:$16 sps:$4 sm:$0xff]  }
  0x87   : > { %1625 = vmatprep.subr.bf16.mxu0 %v3079_v6  ;;  %v3083_v9 = vld [vmem:[#allocation5 + $0x44] ss:$16 sps:$4 sm:$0xff]   ;;  %v3087_v11 = vld [vmem:[#allocation5 + $0x40] ss:$16 sps:$4 sm:$0xff]   ;;  %1614 = vmatprep.mubr.bf16.mxu1 %v3889_v49  ;;  %s2660_s28 = sshll.u32 %s3997_s8, 3  ;;  %vm2553_vm7 = vcmask 7168  }
  0x88   : > { %v3085_v10 = vld [vmem:[#allocation5 + $0x244] ss:$16 sps:$4 sm:$0xff]   ;;  %v3088_v12 = vld [vmem:[#allocation5 + $0x240] ss:$16 sps:$4 sm:$0xff]   ;;  %1655 = vmatprep.mubr.bf16.mxu0 %v3892_v53  ;;  %s394_s22 = scalar_lea.vmem %s3977_s9, %s2660_s28 }
  0x89   : > { %1585 = vmatpush1.bf16.msra.mxu1 %v3081_v7  ;;  %v3089_v13 = vld [vmem:[#allocation5 + $0x64] ss:$16 sps:$4 sm:$0xff]   ;;  %v3093_v15 = vld [vmem:[#allocation5 + $0x60] ss:$16 sps:$4 sm:$0xff]  }
  0x8a   : > { %1626 = vmatpush1.bf16.msra.mxu0 %v3082_v8  ;;  %1586 = vmatprep.subr.bf16.mxu1 %v3083_v9  ;;  %v3091_v14 = vld [vmem:[#allocation5 + $0x264] ss:$16 sps:$4 sm:$0xff]   ;;  %v3094_v16 = vld [vmem:[#allocation5 + $0x260] ss:$16 sps:$4 sm:$0xff]   ;;  %v3172_v8 = vld [vmem:[#allocation5 + $0xc] ss:$16 sps:$4 sm:$0xff]  }
  0x8b   : > { %1627 = vmatprep.subr.bf16.mxu0 %v3085_v10  ;;  %v3095_v17 = vld [vmem:[#allocation5 + $0x84] ss:$16 sps:$4 sm:$0xff]   ;;  %v3099_v19 = vld [vmem:[#allocation5 + $0x80] ss:$16 sps:$4 sm:$0xff]  }
  0x8c   : > { %v3097_v18 = vld [vmem:[#allocation5 + $0x284] ss:$16 sps:$4 sm:$0xff]   ;;  %v3100_v20 = vld [vmem:[#allocation5 + $0x280] ss:$16 sps:$4 sm:$0xff]  }
  0x8d   : > { %1587 = vmatpush1.bf16.msra.mxu1 %v3087_v11  ;;  %v3101_v21 = vld [vmem:[#allocation5 + $0xa4] ss:$16 sps:$4 sm:$0xff]   ;;  %v3105_v23 = vld [vmem:[#allocation5 + $0xa0] ss:$16 sps:$4 sm:$0xff]   ;;  %v3170_v11 = vld [vmem:[#allocation5 + $0x8] ss:$16 sps:$4 sm:$0xff]  }
  0x8e   : > { %1628 = vmatpush1.bf16.msra.mxu0 %v3088_v12  ;;  %1588 = vmatprep.subr.bf16.mxu1 %v3089_v13  ;;  %v3103_v22 = vld [vmem:[#allocation5 + $0x2a4] ss:$16 sps:$4 sm:$0xff]   ;;  %v3106_v24 = vld [vmem:[#allocation5 + $0x2a0] ss:$16 sps:$4 sm:$0xff]  }
  0x8f   : > { %1629 = vmatprep.subr.bf16.mxu0 %v3091_v14  ;;  %v3107_v25 = vld [vmem:[#allocation5 + $0xc4] ss:$16 sps:$4 sm:$0xff]   ;;  %v3111_v27 = vld [vmem:[#allocation5 + $0xc0] ss:$16 sps:$4 sm:$0xff]   ;;  %v3178_v14 = vld [vmem:[#allocation5 + $0x2c] ss:$16 sps:$4 sm:$0xff]  }
  0x90   : > { %v3109_v26 = vld [vmem:[#allocation5 + $0x2c4] ss:$16 sps:$4 sm:$0xff]   ;;  %v3112_v28 = vld [vmem:[#allocation5 + $0x2c0] ss:$16 sps:$4 sm:$0xff]  }
  0x91   : > { %1589 = vmatpush1.bf16.msra.mxu1 %v3093_v15  ;;  %v3113_v29 = vld [vmem:[#allocation5 + $0xe4] ss:$16 sps:$4 sm:$0xff]   ;;  %v3117_v31 = vld [vmem:[#allocation5 + $0xe0] ss:$16 sps:$4 sm:$0xff]  }
  0x92   : > { %1630 = vmatpush1.bf16.msra.mxu0 %v3094_v16  ;;  %1590 = vmatprep.subr.bf16.mxu1 %v3095_v17  ;;  %v3115_v30 = vld [vmem:[#allocation5 + $0x2e4] ss:$16 sps:$4 sm:$0xff]   ;;  %v3118_v32 = vld [vmem:[#allocation5 + $0x2e0] ss:$16 sps:$4 sm:$0xff]   ;;  %v3176_v16 = vld [vmem:[#allocation5 + $0x28] ss:$16 sps:$4 sm:$0xff]  }
  0x93   : > { %1631 = vmatprep.subr.bf16.mxu0 %v3097_v18  ;;  %v3119_v33 = vld [vmem:[#allocation5 + $0x104] ss:$16 sps:$4 sm:$0xff]   ;;  %v3123_v35 = vld [vmem:[#allocation5 + $0x100] ss:$16 sps:$4 sm:$0xff]   ;;  %v3184_v18 = vld [vmem:[#allocation5 + $0x4c] ss:$16 sps:$4 sm:$0xff]  }
  0x94   : > { %v3121_v34 = vld [vmem:[#allocation5 + $0x304] ss:$16 sps:$4 sm:$0xff]   ;;  %v3124_v36 = vld [vmem:[#allocation5 + $0x300] ss:$16 sps:$4 sm:$0xff]  }
  0x95   : > { %1591 = vmatpush1.bf16.msra.mxu1 %v3099_v19  ;;  %v3125_v37 = vld [vmem:[#allocation5 + $0x124] ss:$16 sps:$4 sm:$0xff]   ;;  %v3129_v39 = vld [vmem:[#allocation5 + $0x120] ss:$16 sps:$4 sm:$0xff]  }
  0x96   : > { %1632 = vmatpush1.bf16.msra.mxu0 %v3100_v20  ;;  %1592 = vmatprep.subr.bf16.mxu1 %v3101_v21  ;;  %v3127_v38 = vld [vmem:[#allocation5 + $0x324] ss:$16 sps:$4 sm:$0xff]   ;;  %v3130_v40 = vld [vmem:[#allocation5 + $0x320] ss:$16 sps:$4 sm:$0xff]   ;;  %v3182_v20 = vld [vmem:[#allocation5 + $0x48] ss:$16 sps:$4 sm:$0xff]  }
  0x97   : > { %1633 = vmatprep.subr.bf16.mxu0 %v3103_v22  ;;  %v3131_v41 = vld [vmem:[#allocation5 + $0x144] ss:$16 sps:$4 sm:$0xff]   ;;  %v3135_v43 = vld [vmem:[#allocation5 + $0x140] ss:$16 sps:$4 sm:$0xff]   ;;  %v3190_v22 = vld [vmem:[#allocation5 + $0x6c] ss:$16 sps:$4 sm:$0xff]  }
  0x98   : > { %v3133_v42 = vld [vmem:[#allocation5 + $0x344] ss:$16 sps:$4 sm:$0xff]   ;;  %v3136_v44 = vld [vmem:[#allocation5 + $0x340] ss:$16 sps:$4 sm:$0xff]  }
  0x99   : > { %1593 = vmatpush1.bf16.msra.mxu1 %v3105_v23  ;;  %v3137_v45 = vld [vmem:[#allocation5 + $0x164] ss:$16 sps:$4 sm:$0xff]   ;;  %v3141_v48 = vld [vmem:[#allocation5 + $0x160] ss:$16 sps:$4 sm:$0xff]  }
  0x9a   : > { %1634 = vmatpush1.bf16.msra.mxu0 %v3106_v24  ;;  %1594 = vmatprep.subr.bf16.mxu1 %v3107_v25  ;;  %v3139_v46 = vld [vmem:[#allocation5 + $0x364] ss:$16 sps:$4 sm:$0xff]   ;;  %v3142_v51 = vld [vmem:[#allocation5 + $0x360] ss:$16 sps:$4 sm:$0xff]   ;;  %v3188_v24 = vld [vmem:[#allocation5 + $0x68] ss:$16 sps:$4 sm:$0xff]  }
  0x9b   : > { %1635 = vmatprep.subr.bf16.mxu0 %v3109_v26  ;;  %v3143_v52 = vld [vmem:[#allocation5 + $0x184] ss:$16 sps:$4 sm:$0xff]   ;;  %v3147_v55 = vld [vmem:[#allocation5 + $0x180] ss:$16 sps:$4 sm:$0xff]   ;;  %v3196_v26 = vld [vmem:[#allocation5 + $0x8c] ss:$16 sps:$4 sm:$0xff]  }
  0x9c   : > { %v3145_v54 = vld [vmem:[#allocation5 + $0x384] ss:$16 sps:$4 sm:$0xff]   ;;  %v3148_v56 = vld [vmem:[#allocation5 + $0x380] ss:$16 sps:$4 sm:$0xff]  }
  0x9d   : > { %1595 = vmatpush1.bf16.msra.mxu1 %v3111_v27  ;;  %v3149_v57 = vld [vmem:[#allocation5 + $0x1a4] ss:$16 sps:$4 sm:$0xff]   ;;  %v3153_v59 = vld [vmem:[#allocation5 + $0x1a0] ss:$16 sps:$4 sm:$0xff]  }
  0x9e   : > { %1636 = vmatpush1.bf16.msra.mxu0 %v3112_v28  ;;  %1596 = vmatprep.subr.bf16.mxu1 %v3113_v29  ;;  %v3151_v58 = vld [vmem:[#allocation5 + $0x3a4] ss:$16 sps:$4 sm:$0xff]   ;;  %v3154_v60 = vld [vmem:[#allocation5 + $0x3a0] ss:$16 sps:$4 sm:$0xff]   ;;  %v3194_v28 = vld [vmem:[#allocation5 + $0x88] ss:$16 sps:$4 sm:$0xff]  }
  0x9f   : > { %1637 = vmatprep.subr.bf16.mxu0 %v3115_v30  ;;  %v3155_v61 = vld [vmem:[#allocation5 + $0x1c4] ss:$16 sps:$4 sm:$0xff]   ;;  %v3159_v63 = vld [vmem:[#allocation5 + $0x1c0] ss:$16 sps:$4 sm:$0xff]   ;;  %v3202_v30 = vld [vmem:[#allocation5 + $0xac] ss:$16 sps:$4 sm:$0xff]  }
  0xa0   : > { %v3157_v62 = vld [vmem:[#allocation5 + $0x3c4] ss:$16 sps:$4 sm:$0xff]   ;;  %v3160_v0 = vld [vmem:[#allocation5 + $0x3c0] ss:$16 sps:$4 sm:$0xff]  }
  0xa1   : > { %1597 = vmatpush1.bf16.msra.mxu1 %v3117_v31  ;;  %v3161_v1 = vld [vmem:[#allocation5 + $0x1e4] ss:$16 sps:$4 sm:$0xff]   ;;  %v3165_v3 = vld [vmem:[#allocation5 + $0x1e0] ss:$16 sps:$4 sm:$0xff]  }
  0xa2   : > { %1638 = vmatpush1.bf16.msra.mxu0 %v3118_v32  ;;  %1598 = vmatprep.subr.bf16.mxu1 %v3119_v33  ;;  %v3163_v2 = vld [vmem:[#allocation5 + $0x3e4] ss:$16 sps:$4 sm:$0xff]   ;;  %v3166_v4 = vld [vmem:[#allocation5 + $0x3e0] ss:$16 sps:$4 sm:$0xff]   ;;  %v3200_v32 = vld [vmem:[#allocation5 + $0xa8] ss:$16 sps:$4 sm:$0xff]  }
  0xa3   : > { %1639 = vmatprep.subr.bf16.mxu0 %v3121_v34  ;;  %v396_v5 = vld [vmem:[%s3874_s11] sm:$0xff]  ;;  %v398_v7 = vld [vmem:[%s3874_s11 + $0x10] sm:$0xff]  ;;  %v3208_v34 = vld [vmem:[#allocation5 + $0xcc] ss:$16 sps:$4 sm:$0xff]  }
  0xa4   : > { %v3169_v6 = vld [vmem:[#allocation5 + $0x404] ss:$16 sps:$4 sm:$0xff]   ;;  %v3898_v9 = vpack.c.bf16 %v396_v5, %v396_v5  ;;  %v3167_v10 = vld [vmem:[#allocation5 + $0x400] ss:$16 sps:$4 sm:$0xff]   ;;  %v3900_v12 = vpack.c.bf16 %v398_v7, %v398_v7  ;;  %v3256_v5 = vld [vmem:[#allocation5 + $0x1cc] ss:$16 sps:$4 sm:$0xff]  }
  0xa5   : > { %1599 = vmatpush1.bf16.msra.mxu1 %v3123_v35  ;;  %v3175_v13 = vld [vmem:[#allocation5 + $0x424] ss:$16 sps:$4 sm:$0xff]   ;;  %v3173_v15 = vld [vmem:[#allocation5 + $0x420] ss:$16 sps:$4 sm:$0xff]   ;;  %v401_v35 = vld [vmem:[%s3874_s11 + $0x28] sm:$0xff] }
  0xa6   : > { %1640 = vmatpush1.bf16.msra.mxu0 %v3124_v36  ;;  %1600 = vmatprep.subr.bf16.mxu1 %v3125_v37  ;;  %v3181_v17 = vld [vmem:[#allocation5 + $0x444] ss:$16 sps:$4 sm:$0xff]   ;;  %v3179_v19 = vld [vmem:[#allocation5 + $0x440] ss:$16 sps:$4 sm:$0xff]   ;;  %v3906_v36 = vpack.c.bf16 %v401_v35, %v401_v35  ;;  %v3254_v7 = vld [vmem:[#allocation5 + $0x1c8] ss:$16 sps:$4 sm:$0xff]  }
  0xa7   : > { %1641 = vmatprep.subr.bf16.mxu0 %v3127_v38  ;;  %v3187_v21 = vld [vmem:[#allocation5 + $0x464] ss:$16 sps:$4 sm:$0xff]   ;;  %v3185_v23 = vld [vmem:[#allocation5 + $0x460] ss:$16 sps:$4 sm:$0xff]   ;;  %v3206_v38 = vld [vmem:[#allocation5 + $0xc8] ss:$16 sps:$4 sm:$0xff]  }
  0xa8   : > { %v3193_v25 = vld [vmem:[#allocation5 + $0x484] ss:$16 sps:$4 sm:$0xff]   ;;  %v3191_v27 = vld [vmem:[#allocation5 + $0x480] ss:$16 sps:$4 sm:$0xff]  }
  0xa9   : > { %1601 = vmatpush1.bf16.msra.mxu1 %v3129_v39  ;;  %v3199_v29 = vld [vmem:[#allocation5 + $0x4a4] ss:$16 sps:$4 sm:$0xff]   ;;  %v3197_v31 = vld [vmem:[#allocation5 + $0x4a0] ss:$16 sps:$4 sm:$0xff]  }
  0xaa   : > { %1642 = vmatpush1.bf16.msra.mxu0 %v3130_v40  ;;  %1602 = vmatprep.subr.bf16.mxu1 %v3131_v41  ;;  %v3205_v33 = vld [vmem:[#allocation5 + $0x4c4] ss:$16 sps:$4 sm:$0xff]   ;;  %v3203_v37 = vld [vmem:[#allocation5 + $0x4c0] ss:$16 sps:$4 sm:$0xff]   ;;  %v3214_v40 = vld [vmem:[#allocation5 + $0xec] ss:$16 sps:$4 sm:$0xff]  }
  0xab   : > { %1643 = vmatprep.subr.bf16.mxu0 %v3133_v42  ;;  %v3211_v39 = vld [vmem:[#allocation5 + $0x4e4] ss:$16 sps:$4 sm:$0xff]   ;;  %v3209_v41 = vld [vmem:[#allocation5 + $0x4e0] ss:$16 sps:$4 sm:$0xff]   ;;  %v3212_v42 = vld [vmem:[#allocation5 + $0xe8] ss:$16 sps:$4 sm:$0xff]  }
  0xac   : > { %v3223_v47 = vld [vmem:[#allocation5 + $0x524] ss:$16 sps:$4 sm:$0xff]  }
  0xad   : > { %1603 = vmatpush1.bf16.msra.mxu1 %v3135_v43  ;;  %v3217_v43 = vld [vmem:[#allocation5 + $0x504] ss:$16 sps:$4 sm:$0xff]  }
  0xae   : > { %1644 = vmatpush1.bf16.msra.mxu0 %v3136_v44  ;;  %1604 = vmatprep.subr.bf16.mxu1 %v3137_v45  ;;  %v3220_v44 = vld [vmem:[#allocation5 + $0x10c] ss:$16 sps:$4 sm:$0xff]   ;;  %v3215_v45 = vld [vmem:[#allocation5 + $0x500] ss:$16 sps:$4 sm:$0xff]  }
  0xaf   : > { %1645 = vmatprep.subr.bf16.mxu0 %v3139_v46  ;;  %v3218_v46 = vld [vmem:[#allocation5 + $0x108] ss:$16 sps:$4 sm:$0xff]   ;;  %v3367_v35 = vld [vmem:[#allocation7 + $0x24] ss:$8 sps:$4 sm:$0xff]  }
  0xb1   : > { %1605 = vmatpush1.bf16.msra.mxu1 %v3141_v48  ;;  %v3226_v48 = vld [vmem:[#allocation5 + $0x12c] ss:$16 sps:$4 sm:$0xff]  }
  0xb2   : > { %1646 = vmatpush1.bf16.msra.mxu0 %v3142_v51  ;;  %1606 = vmatprep.subr.bf16.mxu1 %v3143_v52  ;;  %v3229_v51 = vld [vmem:[#allocation5 + $0x544] ss:$16 sps:$4 sm:$0xff]   ;;  %v3232_v52 = vld [vmem:[#allocation5 + $0x14c] ss:$16 sps:$4 sm:$0xff]  }
  0xb3   : > { %1647 = vmatprep.subr.bf16.mxu0 %v3145_v54  ;;  %v3227_v54 = vld [vmem:[#allocation5 + $0x540] ss:$16 sps:$4 sm:$0xff]  }
  0xb5   : > { %1607 = vmatpush1.bf16.msra.mxu1 %v3147_v55  ;;  %v3230_v55 = vld [vmem:[#allocation5 + $0x148] ss:$16 sps:$4 sm:$0xff]  }
  0xb6   : > { %1648 = vmatpush1.bf16.msra.mxu0 %v3148_v56  ;;  %1608 = vmatprep.subr.bf16.mxu1 %v3149_v57  ;;  %v3235_v56 = vld [vmem:[#allocation5 + $0x564] ss:$16 sps:$4 sm:$0xff]   ;;  %v3238_v57 = vld [vmem:[#allocation5 + $0x16c] ss:$16 sps:$4 sm:$0xff]  }
  0xb7   : > { %1649 = vmatprep.subr.bf16.mxu0 %v3151_v58  ;;  %v3233_v58 = vld [vmem:[#allocation5 + $0x560] ss:$16 sps:$4 sm:$0xff]  }
  0xb9   : > { %1609 = vmatpush1.bf16.msra.mxu1 %v3153_v59  ;;  %v3236_v59 = vld [vmem:[#allocation5 + $0x168] ss:$16 sps:$4 sm:$0xff]  }
  0xba   : > { %1650 = vmatpush1.bf16.msra.mxu0 %v3154_v60  ;;  %1610 = vmatprep.subr.bf16.mxu1 %v3155_v61  ;;  %v3241_v60 = vld [vmem:[#allocation5 + $0x584] ss:$16 sps:$4 sm:$0xff]   ;;  %v3244_v61 = vld [vmem:[#allocation5 + $0x18c] ss:$16 sps:$4 sm:$0xff]  }
  0xbb   : > { %1651 = vmatprep.subr.bf16.mxu0 %v3157_v62  ;;  %v3239_v62 = vld [vmem:[#allocation5 + $0x580] ss:$16 sps:$4 sm:$0xff]  }
  0xbd   : > { %1611 = vmatpush1.bf16.msra.mxu1 %v3159_v63  ;;  %v3242_v63 = vld [vmem:[#allocation5 + $0x188] ss:$16 sps:$4 sm:$0xff]  }
  0xbe   : > { %1652 = vmatpush1.bf16.msra.mxu0 %v3160_v0  ;;  %1612 = vmatprep.subr.bf16.mxu1 %v3161_v1  ;;  %v3247_v0 = vld [vmem:[#allocation5 + $0x5a4] ss:$16 sps:$4 sm:$0xff]   ;;  %v3250_v1 = vld [vmem:[#allocation5 + $0x1ac] ss:$16 sps:$4 sm:$0xff]  }
  0xbf   : > { %1653 = vmatprep.subr.bf16.mxu0 %v3163_v2  ;;  %v3245_v2 = vld [vmem:[#allocation5 + $0x5a0] ss:$16 sps:$4 sm:$0xff]  }
  0xc1   : > { %1613 = vmatpush1.bf16.msra.mxu1 %v3165_v3  ;;  %v3248_v3 = vld [vmem:[#allocation5 + $0x1a8] ss:$16 sps:$4 sm:$0xff]  }
  0xc2   : > { %1654 = vmatpush1.bf16.msra.mxu0 %v3166_v4  ;;  %1705 = vmatprep.subr.bf16.mxu1 %v3172_v8  ;;  %v3253_v4 = vld [vmem:[#allocation5 + $0x5c4] ss:$16 sps:$4 sm:$0xff]  }
  0xc3   : > { %1664 = vmatprep.subr.bf16.mxu0 %v3169_v6  ;;  %v3251_v6 = vld [vmem:[#allocation5 + $0x5c0] ss:$16 sps:$4 sm:$0xff]   ;;  %v3259_v8 = vld [vmem:[#allocation5 + $0x5e4] ss:$16 sps:$4 sm:$0xff]  }
  0xc4   : > { %1615 = vmatmul.mubr.bf16.vlgmr.msra.gmra.mrb[0].mxu1 %v3898_v9 }
  0xc5   : > { %1656 = vmatmul.mubr.bf16.vlgmr.msra.gmra.mrb[0].mxu0 %v3900_v12  ;;  %1706 = vmatpush1.bf16.msra.mxu1 %v3170_v11  ;;  %v3257_v11 = vld [vmem:[#allocation5 + $0x5e0] ss:$16 sps:$4 sm:$0xff]  }
  0xc6   : > { %1665 = vmatpush1.bf16.msra.mxu0 %v3167_v10  ;;  %1707 = vmatprep.subr.bf16.mxu1 %v3178_v14  ;;  %v3262_v10 = vld [vmem:[#allocation5 + $0x1ec] ss:$16 sps:$4 sm:$0xff]   ;;  %v400_v14 = vld [vmem:[%s3874_s11 + $0x20] sm:$0xff] }
  0xc7   : > { %1666 = vmatprep.subr.bf16.mxu0 %v3175_v13  ;;  %1737 = vmatprep.mubr.bf16.mxu1 %v3889_v49  ;;  %v3221_v49 = vld [vmem:[#allocation5 + $0x520] ss:$16 sps:$4 sm:$0xff]   ;;  %v3260_v13 = vld [vmem:[#allocation5 + $0x1e8] ss:$16 sps:$4 sm:$0xff]  }
  0xc8   : > { %1696 = vmatprep.mubr.bf16.mxu0 %v3906_v36 }
  0xc9   : > { %1708 = vmatpush1.bf16.msra.mxu1 %v3176_v16  ;;  %v3910_v16 = vpack.c.bf16 %v400_v14, %v400_v14  ;;  %v3325_v14 = vld [vmem:[#allocation5 + $0x48c] ss:$16 sps:$4 sm:$0xff]  }
  0xca   : > { %1667 = vmatpush1.bf16.msra.mxu0 %v3173_v15  ;;  %1709 = vmatprep.subr.bf16.mxu1 %v3184_v18  ;;  %v3265_v15 = vld [vmem:[#allocation5 + $0x20c] ss:$16 sps:$4 sm:$0xff]  }
  0xcb   : > { %1668 = vmatprep.subr.bf16.mxu0 %v3181_v17  ;;  %v3263_v17 = vld [vmem:[#allocation5 + $0x208] ss:$16 sps:$4 sm:$0xff]   ;;  %v3268_v18 = vld [vmem:[#allocation5 + $0x22c] ss:$16 sps:$4 sm:$0xff]  }
  0xcd   : > { %1710 = vmatpush1.bf16.msra.mxu1 %v3182_v20  ;;  %v3271_v20 = vld [vmem:[#allocation5 + $0x24c] ss:$16 sps:$4 sm:$0xff]  }
  0xce   : > { %1669 = vmatpush1.bf16.msra.mxu0 %v3179_v19  ;;  %1711 = vmatprep.subr.bf16.mxu1 %v3190_v22  ;;  %v3266_v19 = vld [vmem:[#allocation5 + $0x228] ss:$16 sps:$4 sm:$0xff]   ;;  %v3274_v22 = vld [vmem:[#allocation5 + $0x26c] ss:$16 sps:$4 sm:$0xff]  }
  0xcf   : > { %1670 = vmatprep.subr.bf16.mxu0 %v3187_v21  ;;  %v3269_v21 = vld [vmem:[#allocation5 + $0x248] ss:$16 sps:$4 sm:$0xff]  }
  0xd1   : > { %1712 = vmatpush1.bf16.msra.mxu1 %v3188_v24  ;;  %v3277_v24 = vld [vmem:[#allocation5 + $0x28c] ss:$16 sps:$4 sm:$0xff]  }
  0xd2   : > { %1671 = vmatpush1.bf16.msra.mxu0 %v3185_v23  ;;  %1713 = vmatprep.subr.bf16.mxu1 %v3196_v26  ;;  %v3272_v23 = vld [vmem:[#allocation5 + $0x268] ss:$16 sps:$4 sm:$0xff]   ;;  %v3280_v26 = vld [vmem:[#allocation5 + $0x2ac] ss:$16 sps:$4 sm:$0xff]  }
  0xd3   : > { %1672 = vmatprep.subr.bf16.mxu0 %v3193_v25  ;;  %v3275_v25 = vld [vmem:[#allocation5 + $0x288] ss:$16 sps:$4 sm:$0xff]  }
  0xd5   : > { %1714 = vmatpush1.bf16.msra.mxu1 %v3194_v28  ;;  %v3283_v28 = vld [vmem:[#allocation5 + $0x2cc] ss:$16 sps:$4 sm:$0xff]  }
  0xd6   : > { %1673 = vmatpush1.bf16.msra.mxu0 %v3191_v27  ;;  %1715 = vmatprep.subr.bf16.mxu1 %v3202_v30  ;;  %v3278_v27 = vld [vmem:[#allocation5 + $0x2a8] ss:$16 sps:$4 sm:$0xff]   ;;  %v3361_v30 = vld [vmem:[#allocation7 + $0x4] ss:$8 sps:$4 sm:$0xff]  }
  0xd7   : > { %1674 = vmatprep.subr.bf16.mxu0 %v3199_v29  ;;  %v3359_v29 = vld [vmem:[#allocation7] ss:$8 sps:$4 sm:$0xff]  }
  0xd9   : > { %1716 = vmatpush1.bf16.msra.mxu1 %v3200_v32  ;;  %v3284_v32 = vld [vmem:[#allocation5 + $0x2e8] ss:$16 sps:$4 sm:$0xff]  }
  0xda   : > { %1675 = vmatpush1.bf16.msra.mxu0 %v3197_v31  ;;  %1717 = vmatprep.subr.bf16.mxu1 %v3208_v34  ;;  %v3364_v31 = vld [vmem:[#allocation7 + $0x14] ss:$8 sps:$4 sm:$0xff]  }
  0xdb   : > { %1676 = vmatprep.subr.bf16.mxu0 %v3205_v33  ;;  %v3362_v33 = vld [vmem:[#allocation7 + $0x10] ss:$8 sps:$4 sm:$0xff]   ;;  %v3289_v34 = vld [vmem:[#allocation5 + $0x30c] ss:$16 sps:$4 sm:$0xff]  }
  0xdd   : > { %1718 = vmatpush1.bf16.msra.mxu1 %v3206_v38  ;;  %v3292_v38 = vld [vmem:[#allocation5 + $0x32c] ss:$16 sps:$4 sm:$0xff]  }
  0xde   : > { %1677 = vmatpush1.bf16.msra.mxu0 %v3203_v37  ;;  %1719 = vmatprep.subr.bf16.mxu1 %v3214_v40  ;;  %v3287_v37 = vld [vmem:[#allocation5 + $0x308] ss:$16 sps:$4 sm:$0xff]   ;;  %v3370_v40 = vld [vmem:[#allocation7 + $0x34] ss:$8 sps:$4 sm:$0xff]  }
  0xdf   : > { %1678 = vmatprep.subr.bf16.mxu0 %v3211_v39  ;;  %v3365_v39 = vld [vmem:[#allocation7 + $0x20] ss:$8 sps:$4 sm:$0xff]  }
  0xe1   : > { %1720 = vmatpush1.bf16.msra.mxu1 %v3212_v42  ;;  %v3368_v42 = vld [vmem:[#allocation7 + $0x30] ss:$8 sps:$4 sm:$0xff]  }
  0xe2   : > { %1679 = vmatpush1.bf16.msra.mxu0 %v3209_v41  ;;  %1721 = vmatprep.subr.bf16.mxu1 %v3220_v44  ;;  %v3290_v41 = vld [vmem:[#allocation5 + $0x328] ss:$16 sps:$4 sm:$0xff]   ;;  %v3373_v44 = vld [vmem:[#allocation7 + $0x44] ss:$8 sps:$4 sm:$0xff]  }
  0xe3   : > { %1680 = vmatprep.subr.bf16.mxu0 %v3217_v43  ;;  %v3295_v43 = vld [vmem:[#allocation5 + $0x34c] ss:$16 sps:$4 sm:$0xff]  }
  0xe5   : > { %1722 = vmatpush1.bf16.msra.mxu1 %v3218_v46  ;;  %v3371_v46 = vld [vmem:[#allocation7 + $0x40] ss:$8 sps:$4 sm:$0xff]  }
  0xe6   : > { %1681 = vmatpush1.bf16.msra.mxu0 %v3215_v45  ;;  %1723 = vmatprep.subr.bf16.mxu1 %v3226_v48  ;;  %v3293_v45 = vld [vmem:[#allocation5 + $0x348] ss:$16 sps:$4 sm:$0xff]   ;;  %v3376_v48 = vld [vmem:[#allocation7 + $0x54] ss:$8 sps:$4 sm:$0xff]  }
  0xe7   : > { %1682 = vmatprep.subr.bf16.mxu0 %v3223_v47  ;;  %v3298_v47 = vld [vmem:[#allocation5 + $0x36c] ss:$16 sps:$4 sm:$0xff]  }
  0xe9   : > { %1724 = vmatpush1.bf16.msra.mxu1 %v3224_v50  ;;  %v3374_v50 = vld [vmem:[#allocation7 + $0x50] ss:$8 sps:$4 sm:$0xff]  }
  0xea   : > { %1683 = vmatpush1.bf16.msra.mxu0 %v3221_v49  ;;  %1725 = vmatprep.subr.bf16.mxu1 %v3232_v52  ;;  %v3296_v49 = vld [vmem:[#allocation5 + $0x368] ss:$16 sps:$4 sm:$0xff]   ;;  %v3379_v52 = vld [vmem:[#allocation7 + $0x64] ss:$8 sps:$4 sm:$0xff]  }
  0xeb   : > { %1684 = vmatprep.subr.bf16.mxu0 %v3229_v51  ;;  %v3301_v51 = vld [vmem:[#allocation5 + $0x38c] ss:$16 sps:$4 sm:$0xff]  }
  0xed   : > { %1726 = vmatpush1.bf16.msra.mxu1 %v3230_v55  ;;  %v3377_v55 = vld [vmem:[#allocation7 + $0x60] ss:$8 sps:$4 sm:$0xff]  }
  0xee   : > { %1685 = vmatpush1.bf16.msra.mxu0 %v3227_v54  ;;  %1727 = vmatprep.subr.bf16.mxu1 %v3238_v57  ;;  %v3299_v54 = vld [vmem:[#allocation5 + $0x388] ss:$16 sps:$4 sm:$0xff]   ;;  %v3382_v57 = vld [vmem:[#allocation7 + $0x74] ss:$8 sps:$4 sm:$0xff]  }
  0xef   : > { %1686 = vmatprep.subr.bf16.mxu0 %v3235_v56  ;;  %v3304_v56 = vld [vmem:[#allocation5 + $0x3ac] ss:$16 sps:$4 sm:$0xff]  }
  0xf1   : > { %1728 = vmatpush1.bf16.msra.mxu1 %v3236_v59  ;;  %v3380_v59 = vld [vmem:[#allocation7 + $0x70] ss:$8 sps:$4 sm:$0xff]  }
  0xf2   : > { %1687 = vmatpush1.bf16.msra.mxu0 %v3233_v58  ;;  %1729 = vmatprep.subr.bf16.mxu1 %v3244_v61  ;;  %v3302_v58 = vld [vmem:[#allocation5 + $0x3a8] ss:$16 sps:$4 sm:$0xff]   ;;  %v3385_v61 = vld [vmem:[#allocation7 + $0x84] ss:$8 sps:$4 sm:$0xff]  }
  0xf3   : > { %1688 = vmatprep.subr.bf16.mxu0 %v3241_v60  ;;  %v3307_v60 = vld [vmem:[#allocation5 + $0x3cc] ss:$16 sps:$4 sm:$0xff]  }
  0xf5   : > { %1730 = vmatpush1.bf16.msra.mxu1 %v3242_v63  ;;  %v3383_v63 = vld [vmem:[#allocation7 + $0x80] ss:$8 sps:$4 sm:$0xff]  }
  0xf6   : > { %1689 = vmatpush1.bf16.msra.mxu0 %v3239_v62  ;;  %1731 = vmatprep.subr.bf16.mxu1 %v3250_v1  ;;  %v3305_v62 = vld [vmem:[#allocation5 + $0x3c8] ss:$16 sps:$4 sm:$0xff]   ;;  %v3388_v1 = vld [vmem:[#allocation7 + $0x94] ss:$8 sps:$4 sm:$0xff]  }
  0xf7   : > { %1690 = vmatprep.subr.bf16.mxu0 %v3247_v0  ;;  %v3310_v0 = vld [vmem:[#allocation5 + $0x3ec] ss:$16 sps:$4 sm:$0xff]  }
  0xf9   : > { %1732 = vmatpush1.bf16.msra.mxu1 %v3248_v3  ;;  %v3386_v3 = vld [vmem:[#allocation7 + $0x90] ss:$8 sps:$4 sm:$0xff]  }
  0xfa   : > { %1691 = vmatpush1.bf16.msra.mxu0 %v3245_v2  ;;  %1733 = vmatprep.subr.bf16.mxu1 %v3256_v5  ;;  %v3308_v2 = vld [vmem:[#allocation5 + $0x3e8] ss:$16 sps:$4 sm:$0xff]  }
  0xfb   : > { %1692 = vmatprep.subr.bf16.mxu0 %v3253_v4  ;;  %v3313_v4 = vld [vmem:[#allocation5 + $0x40c] ss:$16 sps:$4 sm:$0xff]   ;;  %v3311_v5 = vld [vmem:[#allocation5 + $0x408] ss:$16 sps:$4 sm:$0xff]  }
  0xfd   : > { %1734 = vmatpush1.bf16.msra.mxu1 %v3254_v7  ;;  %v3314_v7 = vld [vmem:[#allocation5 + $0x428] ss:$16 sps:$4 sm:$0xff]  }
  0xfe   : > { %1693 = vmatpush1.bf16.msra.mxu0 %v3251_v6  ;;  %1735 = vmatprep.subr.bf16.mxu1 %v3262_v10  ;;  %v3316_v6 = vld [vmem:[#allocation5 + $0x42c] ss:$16 sps:$4 sm:$0xff]   ;;  %v3317_v10 = vld [vmem:[#allocation5 + $0x448] ss:$16 sps:$4 sm:$0xff]  }
  0xff   : > { %1694 = vmatprep.subr.bf16.mxu0 %v3259_v8  ;;  %v3319_v8 = vld [vmem:[#allocation5 + $0x44c] ss:$16 sps:$4 sm:$0xff]  }
 0x101   : > { %1736 = vmatpush1.bf16.msra.mxu1 %v3260_v13  ;;  %v3320_v13 = vld [vmem:[#allocation5 + $0x468] ss:$16 sps:$4 sm:$0xff]  }
 0x102   : > { %1695 = vmatpush1.bf16.msra.mxu0 %v3257_v11  ;;  %1746 = vmatprep.subr.bf16.mxu1 %v3265_v15  ;;  %v3322_v11 = vld [vmem:[#allocation5 + $0x46c] ss:$16 sps:$4 sm:$0xff]   ;;  %v3323_v15 = vld [vmem:[#allocation5 + $0x488] ss:$16 sps:$4 sm:$0xff]  }
 0x103   : > { %2252 = vmatprep.subr.bf16.mxu0 %v3361_v30  ;;  %v3338_v30 = vld [vmem:[#allocation5 + $0x528] ss:$16 sps:$4 sm:$0xff]  }
 0x104   : > { %1738 = vmatmul.mubr.bf16.vlgmr.msra.gmra.mrb[4].mxu1 %v3898_v9  ;;  %v3281_v9 = vld [vmem:[#allocation5 + $0x2c8] ss:$16 sps:$4 sm:$0xff]  }
 0x105   : > { %1697 = vmatmul.mubr.bf16.vlgmr.msra.gmra.mrb[0].mxu0 %v3910_v16  ;;  %1747 = vmatpush1.bf16.msra.mxu1 %v3263_v17  ;;  %v3328_v17 = vld [vmem:[#allocation5 + $0x4ac] ss:$16 sps:$4 sm:$0xff]  }
 0x106   : > { %1778 = vmatprep.mubr.bf16.mxu1 %v3892_v53  ;;  %1748 = vmatprep.subr.bf16.mxu1 %v3268_v18  ;;  %v3286_v53 = vld [vmem:[#allocation5 + $0x2ec] ss:$16 sps:$4 sm:$0xff]  }
 0x107   : > { %2253 = vmatpush1.bf16.msra.mxu0 %v3359_v29  ;;  %v3331_v18 = vld [vmem:[#allocation5 + $0x4cc] ss:$16 sps:$4 sm:$0xff]   ;;  %v3398_v29 = vld [vmem:[#allocation7 + $0xd0] ss:$8 sps:$4 sm:$0xff]  }
 0x108   : > { %2254 = vmatprep.subr.bf16.mxu0 %v3364_v31  ;;  %v3343_v31 = vld [vmem:[#allocation5 + $0x54c] ss:$16 sps:$4 sm:$0xff]  }
 0x109   : > { %1749 = vmatpush1.bf16.msra.mxu1 %v3266_v19  ;;  %v3391_v19 = vld [vmem:[#allocation7 + $0xa4] ss:$8 sps:$4 sm:$0xff]  }
 0x10a   : > { %1750 = vmatprep.subr.bf16.mxu1 %v3271_v20  ;;  %v3329_v20 = vld [vmem:[#allocation5 + $0x4c8] ss:$16 sps:$4 sm:$0xff]  }
 0x10b   : > { %2255 = vmatpush1.bf16.msra.mxu0 %v3362_v33  ;;  %v3401_v33 = vld [vmem:[#allocation7 + $0xe0] ss:$8 sps:$4 sm:$0xff]  }
 0x10c   : > { %2256 = vmatprep.subr.bf16.mxu0 %v3367_v35  ;;  %v3346_v35 = vld [vmem:[#allocation5 + $0x56c] ss:$16 sps:$4 sm:$0xff]  }
 0x10d   : > { %1751 = vmatpush1.bf16.msra.mxu1 %v3269_v21  ;;  %v3334_v21 = vld [vmem:[#allocation5 + $0x4ec] ss:$16 sps:$4 sm:$0xff]  }
 0x10e   : > { %1752 = vmatprep.subr.bf16.mxu1 %v3274_v22  ;;  %v3394_v22 = vld [vmem:[#allocation7 + $0xb4] ss:$8 sps:$4 sm:$0xff]  }
 0x10f   : > { %2257 = vmatpush1.bf16.msra.mxu0 %v3365_v39  ;;  %v3344_v39 = vld [vmem:[#allocation5 + $0x568] ss:$16 sps:$4 sm:$0xff]  }
 0x110   : > { %2258 = vmatprep.subr.bf16.mxu0 %v3370_v40  ;;  %v3349_v40 = vld [vmem:[#allocation5 + $0x58c] ss:$16 sps:$4 sm:$0xff]  }
 0x111   : > { %1753 = vmatpush1.bf16.msra.mxu1 %v3272_v23  ;;  %v3392_v23 = vld [vmem:[#allocation7 + $0xb0] ss:$8 sps:$4 sm:$0xff]  }
 0x112   : > { %1754 = vmatprep.subr.bf16.mxu1 %v3277_v24  ;;  %v3332_v24 = vld [vmem:[#allocation5 + $0x4e8] ss:$16 sps:$4 sm:$0xff]  }
 0x113   : > { %2259 = vmatpush1.bf16.msra.mxu0 %v3368_v42  ;;  %v3347_v42 = vld [vmem:[#allocation5 + $0x588] ss:$16 sps:$4 sm:$0xff]  }
 0x114   : > { %2260 = vmatprep.subr.bf16.mxu0 %v3373_v44  ;;  %v3350_v44 = vld [vmem:[#allocation5 + $0x5a8] ss:$16 sps:$4 sm:$0xff]  }
 0x115   : > { %1755 = vmatpush1.bf16.msra.mxu1 %v3275_v25  ;;  %v3337_v25 = vld [vmem:[#allocation5 + $0x50c] ss:$16 sps:$4 sm:$0xff]  }
 0x116   : > { %1756 = vmatprep.subr.bf16.mxu1 %v3280_v26  ;;  %v3397_v26 = vld [vmem:[#allocation7 + $0xc4] ss:$8 sps:$4 sm:$0xff]  }
 0x117   : > { %2261 = vmatpush1.bf16.msra.mxu0 %v3371_v46  ;;  %v3353_v46 = vld [vmem:[#allocation5 + $0x5c8] ss:$16 sps:$4 sm:$0xff]  }
 0x118   : > { %2262 = vmatprep.subr.bf16.mxu0 %v3376_v48  ;;  %v3356_v48 = vld [vmem:[#allocation5 + $0x5e8] ss:$16 sps:$4 sm:$0xff]  }
 0x119   : > { %1757 = vmatpush1.bf16.msra.mxu1 %v3278_v27  ;;  %v3395_v27 = vld [vmem:[#allocation7 + $0xc0] ss:$8 sps:$4 sm:$0xff]  }
 0x11a   : > { %1758 = vmatprep.subr.bf16.mxu1 %v3283_v28  ;;  %v3335_v28 = vld [vmem:[#allocation5 + $0x508] ss:$16 sps:$4 sm:$0xff]  }
 0x11b   : > { %2263 = vmatpush1.bf16.msra.mxu0 %v3374_v50 }
 0x11c   : > { %2264 = vmatprep.subr.bf16.mxu0 %v3379_v52 }
 0x11d   : > { %1759 = vmatpush1.bf16.msra.mxu1 %v3281_v9  ;;  %v3340_v9 = vld [vmem:[#allocation5 + $0x52c] ss:$16 sps:$4 sm:$0xff]  }
 0x11e   : > { %1760 = vmatprep.subr.bf16.mxu1 %v3286_v53  ;;  %v3400_v53 = vld [vmem:[#allocation7 + $0xd4] ss:$8 sps:$4 sm:$0xff]  }
 0x11f   : > { %2265 = vmatpush1.bf16.msra.mxu0 %v3377_v55 }
 0x120   : > { %2266 = vmatprep.subr.bf16.mxu0 %v3382_v57  ;;  %v3924_v57 = vld [vmem:[%s3970_s2] sm:$0xf] }
 0x121   : > { %1761 = vmatpush1.bf16.msra.mxu1 %v3284_v32  ;;  %v3403_v32 = vld [vmem:[#allocation7 + $0xe4] ss:$8 sps:$4 sm:$0xff]  }
 0x122   : > { %1762 = vmatprep.subr.bf16.mxu1 %v3289_v34  ;;  %v3341_v34 = vld [vmem:[#allocation5 + $0x548] ss:$16 sps:$4 sm:$0xff]  }
 0x123   : > { %2267 = vmatpush1.bf16.msra.mxu0 %v3380_v59 }
 0x124   : > { %2268 = vmatprep.subr.bf16.mxu0 %v3385_v61 }
 0x125   : > { %1763 = vmatpush1.bf16.msra.mxu1 %v3287_v37  ;;  %v3406_v37 = vld [vmem:[#allocation7 + $0xf4] ss:$8 sps:$4 sm:$0xff]  }
 0x126   : > { %1764 = vmatprep.subr.bf16.mxu1 %v3292_v38  ;;  %v3404_v38 = vld [vmem:[#allocation7 + $0xf0] ss:$8 sps:$4 sm:$0xff]  }
 0x127   : > { %2269 = vmatpush1.bf16.msra.mxu0 %v3383_v63 }
 0x128   : > { %2270 = vmatprep.subr.bf16.mxu0 %v3388_v1 }
 0x129   : > { %1765 = vmatpush1.bf16.msra.mxu1 %v3290_v41  ;;  %v3409_v41 = vld [vmem:[#allocation7 + $0x104] ss:$8 sps:$4 sm:$0xff]  }
 0x12a   : > { %1766 = vmatprep.subr.bf16.mxu1 %v3295_v43  ;;  %v3352_v43 = vld [vmem:[#allocation5 + $0x5ac] ss:$16 sps:$4 sm:$0xff]  }
 0x12b   : > { %2271 = vmatpush1.bf16.msra.mxu0 %v3386_v3 }
 0x12c   : > { %2272 = vmatprep.subr.bf16.mxu0 %v3391_v19  ;;  %v3412_v19 = vld [vmem:[#allocation7 + $0x114] ss:$8 sps:$4 sm:$0xff]  }
 0x12d   : > { %1767 = vmatpush1.bf16.msra.mxu1 %v3293_v45  ;;  %v3355_v45 = vld [vmem:[#allocation5 + $0x5cc] ss:$16 sps:$4 sm:$0xff]  }
 0x12e   : > { %1768 = vmatprep.subr.bf16.mxu1 %v3298_v47  ;;  %v3358_v47 = vld [vmem:[#allocation5 + $0x5ec] ss:$16 sps:$4 sm:$0xff]  }
 0x131   : > { %1769 = vmatpush1.bf16.msra.mxu1 %v3296_v49 }
 0x132   : > { %1770 = vmatprep.subr.bf16.mxu1 %v3301_v51 }
 0x135   : > { %1771 = vmatpush1.bf16.msra.mxu1 %v3299_v54  ;;  %v602_v54 = vlaneseq }
 0x136   : > { %1772 = vmatprep.subr.bf16.mxu1 %v3304_v56 }
 0x137   : > { %v3918_v55 = vshrl.u32 %v602_v54, 7 }
 0x139   : > { %1773 = vmatpush1.bf16.msra.mxu1 %v3302_v58  ;;  %v604_v56 = vsub.s32 0, %v3918_v55  ;;  %v608_v58 = vsub.s32 1, %v3918_v55 }
 0x13a   : > { %1774 = vmatprep.subr.bf16.mxu1 %v3307_v60 }
 0x13b   : > { %v609_v59 = vrot.slane %v3924_v57, %v608_v58 }
 0x13d   : > { %1775 = vmatpush1.bf16.msra.mxu1 %v3305_v62 }
 0x13e   : > { %1776 = vmatprep.subr.bf16.mxu1 %v3310_v0 }
 0x141   : > { %1777 = vmatpush1.bf16.msra.mxu1 %v3308_v2 }
 0x142   : > { %1787 = vmatprep.subr.bf16.mxu1 %v3313_v4 }
 0x144   : > { %1779 = vmatmul.mubr.bf16.vlgmr.msra.gmra.mrb[4].mxu1 %v3900_v12  ;;  %v3326_v12 = vld [vmem:[#allocation5 + $0x4a8] ss:$16 sps:$4 sm:$0xff]  }
 0x145   : > { %1788 = vmatpush1.bf16.msra.mxu1 %v3311_v5  ;;  %1819 = vmatprep.mubr.bf16.mxu1 %v3906_v36  ;;  %v3389_v36 = vld [vmem:[#allocation7 + $0xa0] ss:$8 sps:$4 sm:$0xff]  }
 0x146   : > { %1789 = vmatprep.subr.bf16.mxu1 %v3316_v6  ;;  %2273 = vmatpush1.bf16.msra.mxu0 %v3389_v36  ;;  %v3455_v36 = vld [vmem:[#allocation8 + $0x40] sm:$0xff]  }
 0x147   : > { %2274 = vmatprep.subr.bf16.mxu0 %v3394_v22  ;;  %v3410_v22 = vld [vmem:[#allocation7 + $0x110] ss:$8 sps:$4 sm:$0xff]  }
 0x149   : > { %1790 = vmatpush1.bf16.msra.mxu1 %v3314_v7 }
 0x14a   : > { %1791 = vmatprep.subr.bf16.mxu1 %v3319_v8  ;;  %2275 = vmatpush1.bf16.msra.mxu0 %v3392_v23  ;;  %v3415_v23 = vld [vmem:[#allocation7 + $0x124] ss:$8 sps:$4 sm:$0xff]  }
 0x14b   : > { %2276 = vmatprep.subr.bf16.mxu0 %v3397_v26  ;;  %v3418_v26 = vld [vmem:[#allocation7 + $0x134] ss:$8 sps:$4 sm:$0xff]  }
 0x14d   : > { %1792 = vmatpush1.bf16.msra.mxu1 %v3317_v10 }
 0x14e   : > { %1793 = vmatprep.subr.bf16.mxu1 %v3322_v11  ;;  %2277 = vmatpush1.bf16.msra.mxu0 %v3395_v27  ;;  %v3416_v27 = vld [vmem:[#allocation7 + $0x130] ss:$8 sps:$4 sm:$0xff]  }
 0x14f   : > { %2278 = vmatprep.subr.bf16.mxu0 %v3400_v53  ;;  %v3424_v53 = vld [vmem:[#allocation7 + $0x154] ss:$8 sps:$4 sm:$0xff]  }
 0x151   : > { %1794 = vmatpush1.bf16.msra.mxu1 %v3320_v13 }
 0x152   : > { %1795 = vmatprep.subr.bf16.mxu1 %v3325_v14  ;;  %2279 = vmatpush1.bf16.msra.mxu0 %v3398_v29  ;;  %v3422_v29 = vld [vmem:[#allocation7 + $0x150] ss:$8 sps:$4 sm:$0xff]  }
 0x153   : > { %2280 = vmatprep.subr.bf16.mxu0 %v3403_v32  ;;  %v3430_v32 = vld [vmem:[#allocation7 + $0x174] ss:$8 sps:$4 sm:$0xff]  }
 0x155   : > { %1796 = vmatpush1.bf16.msra.mxu1 %v3323_v15 }
 0x156   : > { %1797 = vmatprep.subr.bf16.mxu1 %v3328_v17  ;;  %2281 = vmatpush1.bf16.msra.mxu0 %v3401_v33  ;;  %v3428_v33 = vld [vmem:[#allocation7 + $0x170] ss:$8 sps:$4 sm:$0xff]  }
 0x157   : > { %2282 = vmatprep.subr.bf16.mxu0 %v3406_v37  ;;  %v3436_v37 = vld [vmem:[#allocation7 + $0x194] ss:$8 sps:$4 sm:$0xff]  }
 0x159   : > { %1798 = vmatpush1.bf16.msra.mxu1 %v3326_v12  ;;  %v3407_v12 = vld [vmem:[#allocation7 + $0x100] ss:$8 sps:$4 sm:$0xff]  }
 0x15a   : > { %1799 = vmatprep.subr.bf16.mxu1 %v3331_v18  ;;  %2283 = vmatpush1.bf16.msra.mxu0 %v3404_v38  ;;  %v3434_v38 = vld [vmem:[#allocation7 + $0x190] ss:$8 sps:$4 sm:$0xff]  }
 0x15b   : > { %2293 = vmatprep.subr.bf16.mxu0 %v3409_v41  ;;  %v3442_v41 = vld [vmem:[#allocation7 + $0x1b4] ss:$8 sps:$4 sm:$0xff]  }
 0x15d   : > { %1800 = vmatpush1.bf16.msra.mxu1 %v3329_v20  ;;  %v3456_v20 = vld [vmem:[#allocation8] sm:$0xff]  }
 0x15e   : > { %1801 = vmatprep.subr.bf16.mxu1 %v3334_v21  ;;  %v3457_v21 = vld [vmem:[#allocation8 + $0x48] sm:$0xff]  }
 0x161   : > { %1802 = vmatpush1.bf16.msra.mxu1 %v3332_v24  ;;  %v3458_v24 = vld [vmem:[#allocation8 + $0x8] sm:$0xff]  }
 0x162   : > { %1803 = vmatprep.subr.bf16.mxu1 %v3337_v25  ;;  %v3413_v25 = vld [vmem:[#allocation7 + $0x120] ss:$8 sps:$4 sm:$0xff]  }
 0x165   : > { %1804 = vmatpush1.bf16.msra.mxu1 %v3335_v28  ;;  %v3421_v28 = vld [vmem:[#allocation7 + $0x144] ss:$8 sps:$4 sm:$0xff]  }
 0x166   : > { %1805 = vmatprep.subr.bf16.mxu1 %v3340_v9  ;;  %v3419_v9 = vld [vmem:[#allocation7 + $0x140] ss:$8 sps:$4 sm:$0xff]  }
 0x169   : > { %1806 = vmatpush1.bf16.msra.mxu1 %v3338_v30  ;;  %v3427_v30 = vld [vmem:[#allocation7 + $0x164] ss:$8 sps:$4 sm:$0xff]  }
 0x16a   : > { %1807 = vmatprep.subr.bf16.mxu1 %v3343_v31  ;;  %v3425_v31 = vld [vmem:[#allocation7 + $0x160] ss:$8 sps:$4 sm:$0xff]  }
 0x16d   : > { %1808 = vmatpush1.bf16.msra.mxu1 %v3341_v34  ;;  %v3433_v34 = vld [vmem:[#allocation7 + $0x184] ss:$8 sps:$4 sm:$0xff]  }
 0x16e   : > { %1809 = vmatprep.subr.bf16.mxu1 %v3346_v35  ;;  %v3431_v35 = vld [vmem:[#allocation7 + $0x180] ss:$8 sps:$4 sm:$0xff]  }
 0x171   : > { %1810 = vmatpush1.bf16.msra.mxu1 %v3344_v39  ;;  %v3439_v39 = vld [vmem:[#allocation7 + $0x1a4] ss:$8 sps:$4 sm:$0xff]  }
 0x172   : > { %1811 = vmatprep.subr.bf16.mxu1 %v3349_v40  ;;  %v3437_v40 = vld [vmem:[#allocation7 + $0x1a0] ss:$8 sps:$4 sm:$0xff]  }
 0x175   : > { %1812 = vmatpush1.bf16.msra.mxu1 %v3347_v42  ;;  %v3440_v42 = vld [vmem:[#allocation7 + $0x1b0] ss:$8 sps:$4 sm:$0xff]  }
 0x176   : > { %1813 = vmatprep.subr.bf16.mxu1 %v3352_v43  ;;  %v3445_v43 = vld [vmem:[#allocation7 + $0x1c4] ss:$8 sps:$4 sm:$0xff]  }
 0x179   : > { %1814 = vmatpush1.bf16.msra.mxu1 %v3350_v44  ;;  %v3443_v44 = vld [vmem:[#allocation7 + $0x1c0] ss:$8 sps:$4 sm:$0xff]  }
 0x17a   : > { %1815 = vmatprep.subr.bf16.mxu1 %v3355_v45  ;;  %v3448_v45 = vld [vmem:[#allocation7 + $0x1d4] ss:$8 sps:$4 sm:$0xff]  }
 0x17d   : > { %1816 = vmatpush1.bf16.msra.mxu1 %v3353_v46  ;;  %v3446_v46 = vld [vmem:[#allocation7 + $0x1d0] ss:$8 sps:$4 sm:$0xff]  }
 0x17e   : > { %1817 = vmatprep.subr.bf16.mxu1 %v3358_v47  ;;  %v3451_v47 = vld [vmem:[#allocation7 + $0x1e4] ss:$8 sps:$4 sm:$0xff]  }
 0x181   : > { %1818 = vmatpush1.bf16.msra.mxu1 %v3356_v48  ;;  %v3449_v48 = vld [vmem:[#allocation7 + $0x1e0] ss:$8 sps:$4 sm:$0xff]  }
 0x182   : > { %2946 = vmatprep.subr.bf16.mxu1 %v3455_v36  ;;  %v3465_v36 = vld [vmem:[#allocation8 + $0x68] sm:$0xff]  }
 0x184   : > { %1820 = vmatmul.mubr.bf16.vlgmr.msra.gmra.mrb[4].mxu1 %v3910_v16  ;;  %v605_v16 = vrot.slane %v3924_v57, %v604_v56 }
 0x185   : > { %2947 = vmatpush3.bf16.msra.mxu1 %v3456_v20  ;;  %v3466_v20 = vld [vmem:[#allocation8 + $0x28] sm:$0xff]  }
 0x186   : > { %2948 = vmatprep.subr.bf16.mxu1 %v3457_v21  ;;  %v3467_v21 = vld [vmem:[#allocation8 + $0x70] sm:$0xff]  }
 0x189   : > { %2949 = vmatpush3.bf16.msra.mxu1 %v3458_v24  ;;  %v3470_v24 = vld [vmem:[#allocation8 + $0x38] sm:$0xff]  }
 0x197   : > { %v1616_v49 = vpop.f32.mrb[0].mxu1 }
 0x198   : > { %v1618_v50 = vpop.f32.mrb[1].mxu1  ;;  %v1617_v60 = vadd.f32 %v1616_v49, %v605_v16  ;;  %v3454_v49 = vld [vmem:[#allocation7 + $0x1f4] ss:$8 sps:$4 sm:$0xff]  }
 0x199   : > { %v1620_v51 = vpop.f32.mrb[2].mxu1  ;;  %v1619_v61 = vadd.f32 %v1618_v50, %v609_v59  ;;  %v3452_v50 = vld [vmem:[#allocation7 + $0x1f0] ss:$8 sps:$4 sm:$0xff]  }
 0x19a   : > { %v1621_v52 = vpop.f32.mrb[3].mxu1  ;;  %v612_v51 = vsub.s32 2, %v3918_v55 }
 0x19b   : > { %v616_v52 = vsub.s32 3, %v3918_v55 }
 0x19c   : > { %v613_v54 = vrot.slane %v3924_v57, %v612_v51 }
 0x19d   : > { %v617_v16 = vrot.slane %v3924_v57, %v616_v52 }
 0x1d8   : > { %v1698_v62 = vpop.f32.mrb[0].mxu0 }
 0x1d9   : > { %v2969_v63 = vadd.f32 %v1698_v62, %v1617_v60  ;;  %v1700_v0 = vpop.f32.mrb[1].mxu0 }
 0x1da   : > { %v2971_v1 = vadd.f32 %v1700_v0, %v1619_v61  ;;  %v1702_v2 = vpop.f32.mrb[2].mxu0 }
 0x1db   : > { %v1832_v3 = vmin.f32 %v2969_v63, 0.0  ;;  %v1703_v4 = vpop.f32.mrb[3].mxu0  ;;  %vm1828_vm0 = vcmp.gt.f32.partialorder %v2969_v63, 0.0 }
 0x1dc   : > { %v1833_v5 = vmin.f32 %v2971_v1, 0.0  ;;  %vm1829_vm1 = vcmp.gt.f32.partialorder %v2971_v1, 0.0 }
 0x1dd   : > { %v1836_v6 = vmul.f32 1.442695, %v1832_v3 }
 0x1de   : > { %v1838_v7 = vmul.f32 1.442695, %v1833_v5 }
 0x1df   : > { %3471 = vpow2.f32 %v1836_v6 }
 0x1e0   : > { %3473 = vpow2.f32 %v1838_v7 }
 0x1e9   : > { %v3472_v8 = vpop.eup %3471 }
 0x1ea   : > { %v3474_v10 = vpop.eup %3473  ;;  %v2853_v11 = vadd.f32 -1.0, %v3472_v8 }
 0x1eb   : > { %v2854_v13 = vadd.f32 -1.0, %v3474_v10 }
 0x1ec   : > { %v1848_v14 = vsel %vm1828_vm0, %v2969_v63, %v2853_v11 }
 0x1ed   : > { %v1849_v15 = vsel %vm1829_vm1, %v2971_v1, %v2854_v13  ;;  %v1852_v18 = vpack.c.bf16 %v1848_v14, %v1848_v14  ;;  %v3459_v14 = vld [vmem:[#allocation8 + $0x50] sm:$0xff]  }
 0x1ee   : > { %v1853_v17 = vpack.c.bf16 %v1849_v15, %v1849_v15  ;;  %v3460_v15 = vld [vmem:[#allocation8 + $0x10] sm:$0xff]   ;;  %2950 = vmatprep.subr.bf16.mxu1 %v3459_v14 }
 0x1ef   : > { %2951 = vmatpush3.bf16.msra.mxu1 %v3460_v15 }
 0x1f0   : > { %2284 = vmatprep.mubr.bf16.mxu0 %v1853_v17  ;;  %v3461_v17 = vld [vmem:[#allocation8 + $0x58] sm:$0xff]  }
 0x1f1   : > { %2285 = vmatmul.mubr.bf16.vlgmr.msra.gmra.mrb[4].mxu0 %v1852_v18  ;;  %2952 = vmatprep.subr.bf16.mxu1 %v3461_v17  ;;  %v3463_v18 = vld [vmem:[#allocation8 + $0x60] sm:$0xff]  }
 0x1f2   : > { %2294 = vmatpush1.bf16.msra.mxu0 %v3407_v12  ;;  %v3462_v12 = vld [vmem:[#allocation8 + $0x18] sm:$0xff]  }
 0x1f3   : > { %2295 = vmatprep.subr.bf16.mxu0 %v3412_v19  ;;  %2953 = vmatpush3.bf16.msra.mxu1 %v3462_v12  ;;  %v3464_v19 = vld [vmem:[#allocation8 + $0x20] sm:$0xff]  }
 0x1f4   : > { %2954 = vmatprep.subr.bf16.mxu1 %v3463_v18 }
 0x1f6   : > { %2296 = vmatpush1.bf16.msra.mxu0 %v3410_v22  ;;  %v3468_v22 = vld [vmem:[#allocation8 + $0x30] sm:$0xff]  }
 0x1f7   : > { %2297 = vmatprep.subr.bf16.mxu0 %v3415_v23  ;;  %2955 = vmatpush3.bf16.msra.mxu1 %v3464_v19  ;;  %v3469_v23 = vld [vmem:[#allocation8 + $0x78] sm:$0xff]  }
 0x1f8   : > { %2956 = vmatprep.subr.bf16.mxu1 %v3465_v36 }
 0x1fa   : > { %2298 = vmatpush1.bf16.msra.mxu0 %v3413_v25  ;;  %v1920_v25 = vld [vmem:[%s3972_s4] sm:$0x3] }
 0x1fb   : > { %2299 = vmatprep.subr.bf16.mxu0 %v3418_v26  ;;  %2957 = vmatpush3.bf16.msra.mxu1 %v3466_v20  ;;  %v1925_v26 = vrot.slane %v1920_v25, %v604_v56 }
 0x1fc   : > { %2958 = vmatprep.subr.bf16.mxu1 %v3467_v21 }
 0x1fe   : > { %2300 = vmatpush1.bf16.msra.mxu0 %v3416_v27  ;;  %v1929_v27 = vrot.slane %v1920_v25, %v608_v58 }
 0x1ff   : > { %2301 = vmatprep.subr.bf16.mxu0 %v3421_v28  ;;  %2959 = vmatpush3.bf16.msra.mxu1 %v3468_v22 }
 0x200   : > { %2960 = vmatprep.subr.bf16.mxu1 %v3469_v23 }
 0x202   : > { %2302 = vmatpush1.bf16.msra.mxu0 %v3419_v9 }
 0x203   : > { %2303 = vmatprep.subr.bf16.mxu0 %v3424_v53  ;;  %2961 = vmatpush3.bf16.msra.mxu1 %v3470_v24 }
 0x206   : > { %2304 = vmatpush1.bf16.msra.mxu0 %v3422_v29 }
 0x207   : > { %2305 = vmatprep.subr.bf16.mxu0 %v3427_v30 }
 0x20a   : > { %2306 = vmatpush1.bf16.msra.mxu0 %v3425_v31 }
 0x20b   : > { %2307 = vmatprep.subr.bf16.mxu0 %v3430_v32 }
 0x20e   : > { %2308 = vmatpush1.bf16.msra.mxu0 %v3428_v33 }
 0x20f   : > { %2309 = vmatprep.subr.bf16.mxu0 %v3433_v34 }
 0x212   : > { %2310 = vmatpush1.bf16.msra.mxu0 %v3431_v35 }
 0x213   : > { %2311 = vmatprep.subr.bf16.mxu0 %v3436_v37 }
 0x216   : > { %2312 = vmatpush1.bf16.msra.mxu0 %v3434_v38 }
 0x217   : > { %2313 = vmatprep.subr.bf16.mxu0 %v3439_v39 }
 0x21a   : > { %2314 = vmatpush1.bf16.msra.mxu0 %v3437_v40 }
 0x21b   : > { %2315 = vmatprep.subr.bf16.mxu0 %v3442_v41 }
 0x21e   : > { %2316 = vmatpush1.bf16.msra.mxu0 %v3440_v42 }
 0x21f   : > { %2317 = vmatprep.subr.bf16.mxu0 %v3445_v43  ;;  %v2923_v43 = vld [vmem:[%s3974_s6] ss:$0 sm:$0xff] }
 0x222   : > { %2318 = vmatpush1.bf16.msra.mxu0 %v3443_v44 }
 0x223   : > { %2319 = vmatprep.subr.bf16.mxu0 %v3448_v45 }
 0x226   : > { %2320 = vmatpush1.bf16.msra.mxu0 %v3446_v46 }
 0x227   : > { %2321 = vmatprep.subr.bf16.mxu0 %v3451_v47 }
 0x22a   : > { %2322 = vmatpush1.bf16.msra.mxu0 %v3449_v48 }
 0x22b   : > { %2323 = vmatprep.subr.bf16.mxu0 %v3454_v49 }
 0x22e   : > { %2324 = vmatpush1.bf16.msra.mxu0 %v3452_v50 }
 0x257   : > { %v1821_v59 = vpop.f32.mrb[4].mxu1 }
 0x258   : > { %v2972_v60 = vadd.f32 %v1821_v59, %v613_v54  ;;  %v1823_v61 = vpop.f32.mrb[5].mxu1  ;;  %v2941_v54 = vld [vmem:[%s3975_s7] ss:$0 sm:$0xff] }
 0x259   : > { %v2973_v62 = vadd.f32 %v1823_v61, %v617_v16  ;;  %v1825_v63 = vpop.f32.mrb[6].mxu1 }
 0x25a   : > { %v1834_v0 = vmin.f32 %v2972_v60, 0.0  ;;  %v1826_v1 = vpop.f32.mrb[7].mxu1  ;;  %vm1830_vm2 = vcmp.gt.f32.partialorder %v2972_v60, 0.0 }
 0x25b   : > { %v1835_v2 = vmin.f32 %v2973_v62, 0.0  ;;  %vm1831_vm3 = vcmp.gt.f32.partialorder %v2973_v62, 0.0 }
 0x25c   : > { %v1840_v3 = vmul.f32 1.442695, %v1834_v0 }
 0x25d   : > { %v1842_v4 = vmul.f32 1.442695, %v1835_v2 }
 0x25e   : > { %3475 = vpow2.f32 %v1840_v3 }
 0x25f   : > { %3477 = vpow2.f32 %v1842_v4 }
 0x268   : > { %v3476_v5 = vpop.eup %3475 }
 0x269   : > { %v3478_v6 = vpop.eup %3477  ;;  %v2855_v7 = vadd.f32 -1.0, %v3476_v5 }
 0x26a   : > { %v2856_v8 = vadd.f32 -1.0, %v3478_v6 }
 0x26b   : > { %v1850_v10 = vsel %vm1830_vm2, %v2972_v60, %v2855_v7  ;;  %v2942_v60 = vld [vmem:[#allocation2] ss:$0 sm:$0xff] }
 0x26c   : > { %v1851_v57 = vsel %vm1831_vm3, %v2973_v62, %v2856_v8  ;;  %v1854_v13 = vpack.c.bf16 %v1850_v10, %v1850_v10 }
 0x26d   : > { %v1855_v11 = vpack.c.bf16 %v1851_v57, %v1851_v57 }
 0x26f   : > { %2325 = vmatprep.mubr.bf16.mxu0 %v1855_v11 }
 0x270   : > { %2326 = vmatmul.mubr.bf16.vlgmr.msra.gmra.mrb[4].mxu0 %v1854_v13 }
 0x343   : > { %v2327_v28 = vpop.f32.mrb[4].mxu0 }
 0x344   : > { %v2974_v9 = vadd.f32 %v2327_v28, %v1925_v26  ;;  %v2329_v53 = vpop.f32.mrb[5].mxu0 }
 0x345   : > { %v2975_v29 = vadd.f32 %v2329_v53, %v1929_v27  ;;  %v2331_v30 = vpop.f32.mrb[6].mxu0 }
 0x346   : > { %v2336_v31 = vmin.f32 %v2974_v9, 0.0  ;;  %v2332_v32 = vpop.f32.mrb[7].mxu0  ;;  %vm2334_vm4 = vcmp.gt.f32.partialorder %v2974_v9, 0.0 }
 0x347   : > { %v2337_v33 = vmin.f32 %v2975_v29, 0.0  ;;  %vm2335_vm5 = vcmp.gt.f32.partialorder %v2975_v29, 0.0 }
 0x348   : > { %v2338_v34 = vmul.f32 1.442695, %v2336_v31 }
 0x349   : > { %v2340_v35 = vmul.f32 1.442695, %v2337_v33 }
 0x34a   : > { %3479 = vpow2.f32 %v2338_v34 }
 0x34b   : > { %3481 = vpow2.f32 %v2340_v35 }
 0x354   : > { %v3480_v37 = vpop.eup %3479 }
 0x355   : > { %v3482_v38 = vpop.eup %3481  ;;  %v2921_v39 = vadd.f32 -1.0, %v3480_v37 }
 0x356   : > { %v2922_v56 = vadd.f32 -1.0, %v3482_v38 }
 0x357   : > { %v2344_v40 = vsel %vm2334_vm4, %v2974_v9, %v2921_v39 }
 0x358   : > { %v2345_v55 = vsel %vm2335_vm5, %v2975_v29, %v2922_v56  ;;  %v2346_v41 = vpack.c.bf16 %v2344_v40, %v2344_v40 }
 0x359   : > { %v2347_v58 = vpack.c.bf16 %v2345_v55, %v2345_v55 }
 0x35b   : > { %2515 = vmatprep.mubr.bf16.mxu1 %v2347_v58 }
 0x35c   : > { %2516 = vmatmul.mubr.bf16.vlgmr.msra.gmra.mrb[8].mxu1 %v2346_v41 }
 0x42f   : > { %v2962_v42 = vpop.f32.mrb[8].mxu1 }
 0x430   : > { %v2963_v44 = vpop.f32.mrb[9].mxu1 }
 0x431   : > { %v2964_v45 = vadd.f32 %v2963_v44, %v2962_v42  ;;  %v2965_v46 = vpop.f32.mrb[10].mxu1 }
 0x432   : > { %v2966_v47 = vpop.f32.mrb[11].mxu1 }
 0x433   : > { %v2518_v48 = vadd.f32 %v2964_v45, %v2923_v43 }
 0x435   : > { %v2524_v49 = vmin.f32 %v2518_v48, 0.0  ;;  %vm2523_vm6 = vcmp.gt.f32.partialorder %v2518_v48, 0.0 }
 0x437   : > { %v2525_v50 = vmul.f32 1.442695, %v2524_v49 }
 0x439   : > { %3483 = vpow2.f32 %v2525_v50 }
 0x443   : > { %v3484_v51 = vpop.eup %3483 }
 0x444   : > { %v2940_v52 = vadd.f32 -1.0, %v3484_v51 }
 0x446   : > { %v2528_v16 = vsel %vm2523_vm6, %v2518_v48, %v2940_v52 }
 0x447   : > { %v2536_v59 = vmul.f32 %v2941_v54, %v2528_v16 }
 0x449   : > { %2537 = vadd.xlane.f32.xlu0 %v2536_v59 }
 0x4d6   : > { %v2538_v61 = vpop.xlane.xlu0 %2537 }
 0x4d7   : > { %v2546_v62 = vadd.f32 %v2942_v60, %v2538_v61 }
 0x4d9   : > { %v2943_v63 = vmul.f32 -1.442695, %v2546_v62 }
 0x4db   : > { %3485 = vpow2.f32 %v2943_v63 }
 0x4e5   : > { %v3486_v0 = vpop.eup %3485 }
 0x4e6   : > { %v2550_v1 = vadd.f32 1.0, %v3486_v0 }
 0x4e8   : > { %3487 = vrcp.f32 %v2550_v1 }
 0x4f2   : > { %v3488_v2 = vpop.eup %3487 }
 0x4f3   : > { %2554 = vst.msk [vmem:[%s394_s22] sm:$0xff] %vm2553_vm7, %v3488_v2 }
 0x4f4 PF: > { %p23_p1 = scmp.ge.s32.totalorder %s3821_s17, 4   ;;  %s3992_s11 = smov %s3637_s12 }
 0x4f5   : > { %s3993_s12 = smov %s3641_s13  ;;  %s3994_s13 = smov %s3831_s24 }
 0x4f6   : > { %s3995_s14 = smov %s3821_s17  ;;  %25 = sbr.rel (!%p23_p1) target bundleno = 8 (0x8), region = 108 }
 0x4fd   :  { %2574 = vsyncpa [#allocation4], 1 }
 0x4fe   :  { %2576 = vsyncpa [#allocation4 + $0x1], 1 }
 0x4ff   :  { %2577 = vsyncpa [#allocation6], 1 }
 0x500   :  { %2578 = vsyncpa [#allocation9], 1 }

</bundles_post_ra>
